<compile_context>
chip_gen: v7x
topology: tpu7x:2x2x1
jax: 0.10.0
libtpu: 0.0.40
codegen_flags: <defaults>
</compile_context>

<pallas_src>
import functools

import jax
import jax.numpy as jnp
from jax.experimental import pallas as pl
from jax.experimental.pallas import tpu as pltpu


# ----------------------------------------------------------------------------
# Kernel (one batch tile per grid step; weights resident across steps)
# ----------------------------------------------------------------------------
def _fusion_head_kernel(
    f_ref, e_ref,          # encoder outputs (bf16)                          [bB, Dvp], [bB, Dt]
    w_f_ref, b_f_ref,      # [proj_visual(BN-folded) | layer_attn_visual]    [Dvp, 2P], [1, 2P]
    w_e_ref, b_e_ref,      # [proj_text(BN-folded)   | layer_attn_text]      [Dt, 2P], [1, 2P]
    w_fc_ref, b_fc_ref,    # fc_as_self_attn with self_attn_bn folded        [4P, 4P], [1, 4P]
    w_cls_ref, b_cls_ref,  # cls_layer (output padded to lane width)         [4P, Cp], [1, Cp]
    out_ref,               # [bB, Cp] f32
):
    pp = b_f_ref.shape[-1] // 2        # padded dim_proj (128) — static at trace time
    bf16 = w_fc_ref.dtype

    # One fused matmul per encoder output: proj + gate columns side by side.
    rf = jnp.dot(f_ref[...], w_f_ref[...],
                 preferred_element_type=jnp.float32) + b_f_ref[...]     # [bB, 2P]
    re = jnp.dot(e_ref[...], w_e_ref[...],
                 preferred_element_type=jnp.float32) + b_e_ref[...]     # [bB, 2P]

    # Lane-aligned (128) splits; relu on VPU, sigmoid on EUP (co-issue).
    f_tilde = jnp.maximum(rf[:, :pp], 0.0)       # relu(BN(proj_visual(f)))
    alpha_e = jax.nn.sigmoid(rf[:, pp:])         # sigmoid(layer_attn_visual(f))
    e_tilde = jnp.maximum(re[:, :pp], 0.0)       # relu(BN(proj_text(e)))
    alpha_v = jax.nn.sigmoid(re[:, pp:])         # sigmoid(layer_attn_text(e))

    # joint built directly in bf16 (per-block cast) — halves concat traffic and
    # removes the separate full-width f32->bf16 copy before the fc matmul.
    joint = jnp.concatenate(
        [(alpha_v * f_tilde).astype(bf16),
         (alpha_e * e_tilde).astype(bf16),
         f_tilde.astype(bf16),
         e_tilde.astype(bf16)], axis=1)                                   # [bB, 4P] bf16

    # mid = BN(fc(joint)) — BN already folded into w_fc/b_fc.
    mid = jnp.dot(joint, w_fc_ref[...],
                  preferred_element_type=jnp.float32) + b_fc_ref[...]     # [bB, 4P]

    # logits = cls(relu(mid))   (dropout = identity in eval mode); relu+cast fused.
    h = jnp.maximum(mid, 0.0).astype(bf16)
    logits = jnp.dot(h, w_cls_ref[...],
                     preferred_element_type=jnp.float32) + b_cls_ref[...] # [bB, Cp]
    out_ref[...] = logits.astype(out_ref.dtype)


# ----------------------------------------------------------------------------
# Host-side weight preparation (one-time): fold BN, fuse, pad, cast to bf16.
# ----------------------------------------------------------------------------
def _bn_scale_shift(gamma, beta, mean, var, eps=1e-5):
    scale = gamma / jnp.sqrt(var + eps)
    return scale, beta - mean * scale


def _round_up(x, m):
    return -(-x // m) * m


def prepare_params(params, pp=128, out_pad=128):
    """Fold BN into linears, fuse per-input weights, pad dims, cast bf16."""
    P = params["w_pv"].shape[1]        # dim_proj (100)
    Dv = params["w_pv"].shape[0]       # dim_visual_repr (1000)
    dv_pad = _round_up(Dv, 128)        # 1000 -> 1024 (lane/sublane aligned contraction)

    sc_v, sh_v = _bn_scale_shift(*params["bn_v"])
    sc_t, sh_t = _bn_scale_shift(*params["bn_t"])
    sc_sa, sh_sa = _bn_scale_shift(*params["bn_sa"])

    # Fold BN (per-output-feature scale/shift) into the preceding linear.
    w_pv = params["w_pv"] * sc_v[None, :]
    b_pv = params["b_pv"] * sc_v + sh_v
    w_pt = params["w_pt"] * sc_t[None, :]
    b_pt = params["b_pt"] * sc_t + sh_t
    w_fc = params["w_fc"] * sc_sa[None, :]
    b_fc = params["b_fc"] * sc_sa + sh_sa

    def padc(x, to):                   # zero-pad last dim to `to`
        return jnp.pad(x, [(0, 0)] * (x.ndim - 1) + [(0, to - x.shape[-1])])

    def padr(x, to):                   # zero-pad first dim to `to`
        return jnp.pad(x, [(0, to - x.shape[0])] + [(0, 0)] * (x.ndim - 1))

    # Fused per-input weights: [proj | gate], each block zero-padded to pp lanes.
    # Visual rows additionally padded Dv -> dv_pad (zeros contribute nothing).
    w_f = padr(jnp.concatenate([padc(w_pv, pp), padc(params["w_av"], pp)], axis=1),
               dv_pad)                                                    # [Dvp, 2pp]
    b_f = jnp.concatenate([padc(b_pv, pp), padc(params["b_av"], pp)])[None, :]
    w_e = jnp.concatenate([padc(w_pt, pp), padc(params["w_at"], pp)], axis=1)  # [Dt, 2pp]
    b_e = jnp.concatenate([padc(b_pt, pp), padc(params["b_at"], pp)])[None, :]

    # fc/cls operate on the 4-way concat layout; re-lay-out their 4*P rows/cols
    # block-wise into 4 blocks of pp so every boundary is lane/sublane aligned.
    # NOTE: padded proj lanes are exactly zero after relu (zero weight + zero
    # folded bias), and padded joint columns hit zero-padded w_fc rows, so the
    # sigmoid(0)=0.5 gate padding contributes nothing.
    def blocked_pad_cols(x):           # last dim 4P -> 4*pp (block-wise)
        lead = x.shape[:-1]
        xb = x.reshape(lead + (4, P))
        xb = jnp.pad(xb, [(0, 0)] * len(lead) + [(0, 0), (0, pp - P)])
        return xb.reshape(lead + (4 * pp,))

    def blocked_pad_rows(x):           # first dim 4P -> 4*pp (block-wise)
        xb = x.reshape((4, P) + x.shape[1:])
        xb = jnp.pad(xb, [(0, 0), (0, pp - P)] + [(0, 0)] * (x.ndim - 1))
        return xb.reshape((4 * pp,) + x.shape[1:])

    w_fc_p = blocked_pad_rows(blocked_pad_cols(w_fc))               # [4pp, 4pp]
    b_fc_p = blocked_pad_cols(b_fc)[None, :]                        # [1, 4pp]
    w_cls_p = padc(blocked_pad_rows(params["w_cls"]), out_pad)      # [4pp, out_pad]
    b_cls_p = padc(params["b_cls"], out_pad)[None, :]               # [1, out_pad]

    bf16 = jnp.bfloat16
    return dict(
        dim_visual=Dv,
        w_f=w_f.astype(bf16), b_f=b_f,
        w_e=w_e.astype(bf16), b_e=b_e,
        w_fc=w_fc_p.astype(bf16), b_fc=b_fc_p,
        w_cls=w_cls_p.astype(bf16), b_cls=b_cls_p,
    )


# ----------------------------------------------------------------------------
# Wrapper: batch grid, weights VMEM-resident across grid steps.
# ----------------------------------------------------------------------------
@functools.partial(jax.jit, static_argnames=("num_class",))
def densenet_bert_mm_head(f_i, e_i, prep, num_class):
    """Runs the fusion head (everything downstream of the encoders) in one kernel."""
    B = f_i.shape[0]
    dv_pad = prep["w_f"].shape[0]
    dt = prep["w_e"].shape[0]
    two_p = prep["b_f"].shape[1]
    four_p = prep["w_fc"].shape[0]
    out_pad = prep["w_cls"].shape[1]

    # Batch tile: multiple of 16 (bf16 sublane pack), capped at 256 to bound
    # VMEM on v7x (64 MiB physical) and keep double-buffering cheap everywhere.
    block_b = min(256, _round_up(B, 16))
    b_pad = _round_up(B, block_b)

    # Pad batch -> b_pad and visual lanes -> dv_pad; bf16 MXU operands
    # (f32 accumulate). Pad+cast fuse into one XLA op under jit.
    f_bf = jnp.pad(f_i, ((0, b_pad - B), (0, dv_pad - f_i.shape[1]))).astype(jnp.bfloat16)
    e_bf = jnp.pad(e_i, ((0, b_pad - B), (0, 0))).astype(jnp.bfloat16)

    args = (
        f_bf, e_bf,
        prep["w_f"], prep["b_f"],
        prep["w_e"], prep["b_e"],
        prep["w_fc"], prep["b_fc"],
        prep["w_cls"], prep["b_cls"],
    )

    def act(shape):                    # batch-tiled activations / output
        return pl.BlockSpec(shape, lambda i: (i, 0))

    def wgt(shape):                    # weights: same block every step (stay resident)
        return pl.BlockSpec(shape, lambda i: (0, 0))

    in_specs = [
        act((block_b, dv_pad)), act((block_b, dt)),
        wgt((dv_pad, two_p)), wgt((1, two_p)),
        wgt((dt, two_p)), wgt((1, two_p)),
        wgt((four_p, four_p)), wgt((1, four_p)),
        wgt((four_p, out_pad)), wgt((1, out_pad)),
    ]

    logits = pl.pallas_call(
        _fusion_head_kernel,
        out_shape=jax.ShapeDtypeStruct((b_pad, out_pad), jnp.float32),
        grid=(b_pad // block_b,),
        in_specs=in_specs,
        out_specs=act((block_b, out_pad)),
        compiler_params=pltpu.CompilerParams(
            dimension_semantics=("parallel",)),   # dual-TC split on v7x; no-op v5e/v6e
    )(*args)
    return logits[:B, :num_class]


# ----------------------------------------------------------------------------
# Pure-JAX f32 reference (Concat4 semantics) for verification.
# ----------------------------------------------------------------------------
def _reference(f_i, e_i, params):
    sc_v, sh_v = _bn_scale_shift(*params["bn_v"])
    sc_t, sh_t = _bn_scale_shift(*params["bn_t"])
    sc_sa, sh_sa = _bn_scale_shift(*params["bn_sa"])
    f_tilde = jax.nn.relu((f_i @ params["w_pv"] + params["b_pv"]) * sc_v + sh_v)
    e_tilde = jax.nn.relu((e_i @ params["w_pt"] + params["b_pt"]) * sc_t + sh_t)
    alpha_v = jax.nn.sigmoid(e_i @ params["w_at"] + params["b_at"])
    alpha_e = jax.nn.sigmoid(f_i @ params["w_av"] + params["b_av"])
    joint = jnp.concatenate(
        [alpha_v * f_tilde, alpha_e * e_tilde, f_tilde, e_tilde], axis=1)
    mid = (joint @ params["w_fc"] + params["b_fc"]) * sc_sa + sh_sa
    return jax.nn.relu(mid) @ params["w_cls"] + params["b_cls"]


def _make_params(key, dim_visual, dim_text, dim_proj, num_class):
    ks = jax.random.split(key, 16)

    def lin(k, din, dout, scale=0.02):
        kw, kb = jax.random.split(k)
        w = scale * jax.random.normal(kw, (din, dout), jnp.float32)
        b = scale * jax.random.normal(kb, (dout,), jnp.float32)
        return w, b

    def bn(k, d):
        k1, k2, k3 = jax.random.split(k, 3)
        gamma = 1.0 + 0.1 * jax.random.normal(k1, (d,), jnp.float32)
        beta = 0.1 * jax.random.normal(k2, (d,), jnp.float32)
        mean = 0.1 * jax.random.normal(k3, (d,), jnp.float32)
        var = jnp.ones((d,), jnp.float32)
        return (gamma, beta, mean, var)

    w_pv, b_pv = lin(ks[0], dim_visual, dim_proj)
    w_pt, b_pt = lin(ks[1], dim_text, dim_proj)
    w_av, b_av = lin(ks[2], dim_visual, dim_proj)     # layer_attn_visual
    w_at, b_at = lin(ks[3], dim_text, dim_proj)       # layer_attn_text
    w_fc, b_fc = lin(ks[4], 4 * dim_proj, 4 * dim_proj)
    w_cls, b_cls = lin(ks[5], 4 * dim_proj, num_class)

    return dict(
        w_pv=w_pv, b_pv=b_pv, w_pt=w_pt, b_pt=b_pt,
        w_av=w_av, b_av=b_av, w_at=w_at, b_at=b_at,
        w_fc=w_fc, b_fc=b_fc, w_cls=w_cls, b_cls=b_cls,
        bn_v=bn(ks[6], dim_proj), bn_t=bn(ks[7], dim_proj),
        bn_sa=bn(ks[8], 4 * dim_proj),
    )


if __name__ == "__main__":
    # Module defaults: dim_visual_repr=1000, dim_text_repr=768, dim_proj=100, num_class=2
    B, DIM_VIS, DIM_TXT, DIM_PROJ, NUM_CLASS = 2, 1000, 768, 100, 2

    key = jax.random.PRNGKey(0)
    k_f, k_e, k_p = jax.random.split(key, 3)

    # Stand-ins for encoder outputs: f_i = flatten(densenet(image)), e_i = bert pooled output.
    f_i = jax.random.normal(k_f, (B, DIM_VIS), jnp.float32)
    e_i = jax.random.normal(k_e, (B, DIM_TXT), jnp.float32)
    params = _make_params(k_p, DIM_VIS, DIM_TXT, DIM_PROJ, NUM_CLASS)

    prep = prepare_params(params)     # one-time: BN fold + fuse + pad + bf16 cast

    # Default tiny batch (B=2): single grid step, padded to one 16-row tile.
    out = densenet_bert_mm_head(f_i, e_i, prep, NUM_CLASS)
    out = jax.block_until_ready(out)
    ref = jax.block_until_ready(_reference(f_i, e_i, params))
    assert out.shape == (B, NUM_CLASS), out.shape
    # bf16 matmul operands (f32 accumulate) -> loosen tolerance vs f32 reference.
    assert jnp.allclose(out, ref, atol=2e-2, rtol=2e-2), (out, ref)

    # Larger batch exercises the multi-step batch grid + batch padding path.
    B2 = 300
    k_f2, k_e2 = jax.random.split(jax.random.PRNGKey(1))
    f_i2 = jax.random.normal(k_f2, (B2, DIM_VIS), jnp.float32)
    e_i2 = jax.random.normal(k_e2, (B2, DIM_TXT), jnp.float32)
    out2 = jax.block_until_ready(densenet_bert_mm_head(f_i2, e_i2, prep, NUM_CLASS))
    ref2 = jax.block_until_ready(_reference(f_i2, e_i2, params))
    assert out2.shape == (B2, NUM_CLASS), out2.shape
    assert jnp.allclose(out2, ref2, atol=2e-2, rtol=2e-2)

    print("KERNEL_OK")
</pallas_src>

<mosaic_0001>
module attributes {stable_mosaic.version = 11 : i64} {
  func.func @_fusion_head_kernel(%arg0: i32, %arg1: memref<16x1024xbf16, #tpu.memory_space<vmem>>, %arg2: memref<16x768xbf16, #tpu.memory_space<vmem>>, %arg3: memref<1024x256xbf16, #tpu.memory_space<vmem>>, %arg4: memref<1x256xf32, #tpu.memory_space<vmem>>, %arg5: memref<768x256xbf16, #tpu.memory_space<vmem>>, %arg6: memref<1x256xf32, #tpu.memory_space<vmem>>, %arg7: memref<512x512xbf16, #tpu.memory_space<vmem>>, %arg8: memref<1x512xf32, #tpu.memory_space<vmem>>, %arg9: memref<512x128xbf16, #tpu.memory_space<vmem>>, %arg10: memref<1x128xf32, #tpu.memory_space<vmem>>, %arg11: memref<16x128xf32, #tpu.memory_space<vmem>>) attributes {dimension_semantics = [#tpu.dimension_semantics<parallel>], iteration_bounds = array<i64: 1>, scalar_prefetch = 0 : i64, scratch_operands = 0 : i64, tpu.core_type = #tpu.core_type<tc>, window_params = [{transform_indices = @transform_0, window_bounds = array<i64: 16, 1024>}, {transform_indices = @transform_1, window_bounds = array<i64: 16, 768>}, {pipeline_mode = #tpu.pipeline_mode<synchronous>, transform_indices = @transform_2, window_bounds = array<i64: 1024, 256>}, {pipeline_mode = #tpu.pipeline_mode<synchronous>, transform_indices = @transform_3, window_bounds = array<i64: 1, 256>}, {pipeline_mode = #tpu.pipeline_mode<synchronous>, transform_indices = @transform_4, window_bounds = array<i64: 768, 256>}, {pipeline_mode = #tpu.pipeline_mode<synchronous>, transform_indices = @transform_5, window_bounds = array<i64: 1, 256>}, {pipeline_mode = #tpu.pipeline_mode<synchronous>, transform_indices = @transform_6, window_bounds = array<i64: 512, 512>}, {pipeline_mode = #tpu.pipeline_mode<synchronous>, transform_indices = @transform_7, window_bounds = array<i64: 1, 512>}, {pipeline_mode = #tpu.pipeline_mode<synchronous>, transform_indices = @transform_8, window_bounds = array<i64: 512, 128>}, {pipeline_mode = #tpu.pipeline_mode<synchronous>, transform_indices = @transform_9, window_bounds = array<i64: 1, 128>}, {transform_indices = @transform_10, window_bounds = array<i64: 16, 128>}]} {
    %c0 = arith.constant 0 : index
    %c0_0 = arith.constant 0 : index
    %0 = vector.load %arg1[%c0, %c0_0] : memref<16x1024xbf16, #tpu.memory_space<vmem>>, vector<16x1024xbf16>
    %c0_1 = arith.constant 0 : index
    %c0_2 = arith.constant 0 : index
    %1 = vector.load %arg3[%c0_1, %c0_2] : memref<1024x256xbf16, #tpu.memory_space<vmem>>, vector<1024x256xbf16>
    %cst = arith.constant dense<0.000000e+00> : vector<16x256xf32>
    %2 = tpu.matmul %0, %1, %cst {dimension_numbers = #tpu.dot_dimension_numbers<[1], [0], [0], [1], [0, 0, 1, 1], [], []>} : vector<16x1024xbf16>, vector<1024x256xbf16>, vector<16x256xf32> -> vector<16x256xf32>
    %c0_3 = arith.constant 0 : index
    %c0_4 = arith.constant 0 : index
    %3 = vector.load %arg4[%c0_3, %c0_4] : memref<1x256xf32, #tpu.memory_space<vmem>>, vector<1x256xf32>
    %4 = vector.broadcast %3 : vector<1x256xf32> to vector<16x256xf32>
    %5 = arith.addf %2, %4 : vector<16x256xf32>
    %c0_5 = arith.constant 0 : index
    %c0_6 = arith.constant 0 : index
    %6 = vector.load %arg2[%c0_5, %c0_6] : memref<16x768xbf16, #tpu.memory_space<vmem>>, vector<16x768xbf16>
    %c0_7 = arith.constant 0 : index
    %c0_8 = arith.constant 0 : index
    %7 = vector.load %arg5[%c0_7, %c0_8] : memref<768x256xbf16, #tpu.memory_space<vmem>>, vector<768x256xbf16>
    %cst_9 = arith.constant dense<0.000000e+00> : vector<16x256xf32>
    %8 = tpu.matmul %6, %7, %cst_9 {dimension_numbers = #tpu.dot_dimension_numbers<[1], [0], [0], [1], [0, 0, 1, 1], [], []>} : vector<16x768xbf16>, vector<768x256xbf16>, vector<16x256xf32> -> vector<16x256xf32>
    %c0_10 = arith.constant 0 : index
    %c0_11 = arith.constant 0 : index
    %9 = vector.load %arg6[%c0_10, %c0_11] : memref<1x256xf32, #tpu.memory_space<vmem>>, vector<1x256xf32>
    %10 = vector.broadcast %9 : vector<1x256xf32> to vector<16x256xf32>
    %11 = arith.addf %8, %10 : vector<16x256xf32>
    %12 = vector.extract_strided_slice %5 {offsets = [0, 0], sizes = [16, 128], strides = [1, 1]} : vector<16x256xf32> to vector<16x128xf32>
    %cst_12 = arith.constant 0.000000e+00 : f32
    %13 = vector.broadcast %cst_12 : f32 to vector<16x128xf32>
    %14 = arith.maximumf %12, %13 : vector<16x128xf32>
    %15 = vector.extract_strided_slice %5 {offsets = [0, 128], sizes = [16, 128], strides = [1, 1]} : vector<16x256xf32> to vector<16x128xf32>
    %16 = arith.negf %15 : vector<16x128xf32>
    %17 = math.exp %16 : vector<16x128xf32>
    %cst_13 = arith.constant 1.000000e+00 : f32
    %18 = vector.broadcast %cst_13 : f32 to vector<16x128xf32>
    %19 = arith.addf %18, %17 : vector<16x128xf32>
    %20 = arith.divf %18, %19 : vector<16x128xf32>
    %21 = vector.extract_strided_slice %11 {offsets = [0, 0], sizes = [16, 128], strides = [1, 1]} : vector<16x256xf32> to vector<16x128xf32>
    %cst_14 = arith.constant 0.000000e+00 : f32
    %22 = vector.broadcast %cst_14 : f32 to vector<16x128xf32>
    %23 = arith.maximumf %21, %22 : vector<16x128xf32>
    %24 = vector.extract_strided_slice %11 {offsets = [0, 128], sizes = [16, 128], strides = [1, 1]} : vector<16x256xf32> to vector<16x128xf32>
    %25 = arith.negf %24 : vector<16x128xf32>
    %26 = math.exp %25 : vector<16x128xf32>
    %cst_15 = arith.constant 1.000000e+00 : f32
    %27 = vector.broadcast %cst_15 : f32 to vector<16x128xf32>
    %28 = arith.addf %27, %26 : vector<16x128xf32>
    %29 = arith.divf %27, %28 : vector<16x128xf32>
    %30 = arith.mulf %29, %14 : vector<16x128xf32>
    %31 = arith.truncf %30 : vector<16x128xf32> to vector<16x128xbf16>
    %32 = arith.mulf %20, %23 : vector<16x128xf32>
    %33 = arith.truncf %32 : vector<16x128xf32> to vector<16x128xbf16>
    %34 = arith.truncf %14 : vector<16x128xf32> to vector<16x128xbf16>
    %35 = arith.truncf %23 : vector<16x128xf32> to vector<16x128xbf16>
    %36 = tpu.concatenate %31, %33, %34, %35 in 1 : vector<16x128xbf16>, vector<16x128xbf16>, vector<16x128xbf16>, vector<16x128xbf16> -> vector<16x512xbf16>
    %c0_16 = arith.constant 0 : index
    %c0_17 = arith.constant 0 : index
    %37 = vector.load %arg7[%c0_16, %c0_17] : memref<512x512xbf16, #tpu.memory_space<vmem>>, vector<512x512xbf16>
    %cst_18 = arith.constant dense<0.000000e+00> : vector<16x512xf32>
    %38 = tpu.matmul %36, %37, %cst_18 {dimension_numbers = #tpu.dot_dimension_numbers<[1], [0], [0], [1], [0, 0, 1, 1], [], []>} : vector<16x512xbf16>, vector<512x512xbf16>, vector<16x512xf32> -> vector<16x512xf32>
    %c0_19 = arith.constant 0 : index
    %c0_20 = arith.constant 0 : index
    %39 = vector.load %arg8[%c0_19, %c0_20] : memref<1x512xf32, #tpu.memory_space<vmem>>, vector<1x512xf32>
    %40 = vector.broadcast %39 : vector<1x512xf32> to vector<16x512xf32>
    %41 = arith.addf %38, %40 : vector<16x512xf32>
    %cst_21 = arith.constant 0.000000e+00 : f32
    %42 = vector.broadcast %cst_21 : f32 to vector<16x512xf32>
    %43 = arith.maximumf %41, %42 : vector<16x512xf32>
    %44 = arith.truncf %43 : vector<16x512xf32> to vector<16x512xbf16>
    %c0_22 = arith.constant 0 : index
    %c0_23 = arith.constant 0 : index
    %45 = vector.load %arg9[%c0_22, %c0_23] : memref<512x128xbf16, #tpu.memory_space<vmem>>, vector<512x128xbf16>
    %cst_24 = arith.constant dense<0.000000e+00> : vector<16x128xf32>
    %46 = tpu.matmul %44, %45, %cst_24 {dimension_numbers = #tpu.dot_dimension_numbers<[1], [0], [0], [1], [0, 0, 1, 1], [], []>} : vector<16x512xbf16>, vector<512x128xbf16>, vector<16x128xf32> -> vector<16x128xf32>
    %c0_25 = arith.constant 0 : index
    %c0_26 = arith.constant 0 : index
    %47 = vector.load %arg10[%c0_25, %c0_26] : memref<1x128xf32, #tpu.memory_space<vmem>>, vector<1x128xf32>
    %48 = vector.broadcast %47 : vector<1x128xf32> to vector<16x128xf32>
    %49 = arith.addf %46, %48 : vector<16x128xf32>
    %c0_27 = arith.constant 0 : index
    %c0_28 = arith.constant 0 : index
    %50 = vector.load %arg11[%c0_27, %c0_28] : memref<16x128xf32, #tpu.memory_space<vmem>>, vector<16x128xf32>
    tpu.vector_store %arg11[%c0_27, %c0_28], %49 {strides = array<i32>} : memref<16x128xf32, #tpu.memory_space<vmem>>, vector<16x128xf32>,
    return
  }
  func.func @transform_0(%arg0: i32) -> (i32, i32) {
    %c0_i32 = arith.constant 0 : i32
    %c0_i32_0 = arith.constant 0 : i32
    return %arg0, %c0_i32 : i32, i32
  }
  func.func @transform_1(%arg0: i32) -> (i32, i32) {
    %c0_i32 = arith.constant 0 : i32
    %c0_i32_0 = arith.constant 0 : i32
    return %arg0, %c0_i32 : i32, i32
  }
  func.func @transform_2(%arg0: i32) -> (i32, i32) {
    %c0_i32 = arith.constant 0 : i32
    %c0_i32_0 = arith.constant 0 : i32
    %c0_i32_1 = arith.constant 0 : i32
    return %c0_i32, %c0_i32_0 : i32, i32
  }
  func.func @transform_3(%arg0: i32) -> (i32, i32) {
    %c0_i32 = arith.constant 0 : i32
    %c0_i32_0 = arith.constant 0 : i32
    %c0_i32_1 = arith.constant 0 : i32
    return %c0_i32, %c0_i32_0 : i32, i32
  }
  func.func @transform_4(%arg0: i32) -> (i32, i32) {
    %c0_i32 = arith.constant 0 : i32
    %c0_i32_0 = arith.constant 0 : i32
    %c0_i32_1 = arith.constant 0 : i32
    return %c0_i32, %c0_i32_0 : i32, i32
  }
  func.func @transform_5(%arg0: i32) -> (i32, i32) {
    %c0_i32 = arith.constant 0 : i32
    %c0_i32_0 = arith.constant 0 : i32
    %c0_i32_1 = arith.constant 0 : i32
    return %c0_i32, %c0_i32_0 : i32, i32
  }
  func.func @transform_6(%arg0: i32) -> (i32, i32) {
    %c0_i32 = arith.constant 0 : i32
    %c0_i32_0 = arith.constant 0 : i32
    %c0_i32_1 = arith.constant 0 : i32
    return %c0_i32, %c0_i32_0 : i32, i32
  }
  func.func @transform_7(%arg0: i32) -> (i32, i32) {
    %c0_i32 = arith.constant 0 : i32
    %c0_i32_0 = arith.constant 0 : i32
    %c0_i32_1 = arith.constant 0 : i32
    return %c0_i32, %c0_i32_0 : i32, i32
  }
  func.func @transform_8(%arg0: i32) -> (i32, i32) {
    %c0_i32 = arith.constant 0 : i32
    %c0_i32_0 = arith.constant 0 : i32
    %c0_i32_1 = arith.constant 0 : i32
    return %c0_i32, %c0_i32_0 : i32, i32
  }
  func.func @transform_9(%arg0: i32) -> (i32, i32) {
    %c0_i32 = arith.constant 0 : i32
    %c0_i32_0 = arith.constant 0 : i32
    %c0_i32_1 = arith.constant 0 : i32
    return %c0_i32, %c0_i32_0 : i32, i32
  }
  func.func @transform_10(%arg0: i32) -> (i32, i32) {
    %c0_i32 = arith.constant 0 : i32
    %c0_i32_0 = arith.constant 0 : i32
    return %arg0, %c0_i32 : i32, i32
  }
}

</mosaic_0001>

<bundles_post_ra>
// kernel: densenet_bert_mm_head.1
= control target key start
LH: loop header
LB: loop body
LE: loop exit
PB: predicated region body
PF: predicated region fallthrough
CT: control target
= control target key end

     0   :  { %15 = vsyncpa [#allocation3], 0  ;;  %s4612_s0 = inlined_call_operand.vmem [shape: bf16[16,1024], index: 0, kind: input, shape index: {}]   ;;  %s4613_s1 = inlined_call_operand.vmem [shape: bf16[16,768], index: 1, kind: input, shape index: {}]   ;;  %s4614_s2 = inlined_call_operand.hbm [shape: bf16[1024,256], index: 2, kind: input, shape index: {}]   ;;  %s4615_s3 = inlined_call_operand.vmem [shape: f32[1,256], index: 3, kind: input, shape index: {}]   ;;  %s4616_s4 = inlined_call_operand.hbm [shape: bf16[768,256], index: 4, kind: input, shape index: {}]   ;;  %s4617_s5 = inlined_call_operand.vmem [shape: f32[1,256], index: 5, kind: input, shape index: {}]   ;;  %s4618_s6 = inlined_call_operand.hbm [shape: bf16[512,512], index: 6, kind: input, shape index: {}]   ;;  %s4619_s7 = inlined_call_operand.vmem [shape: f32[1,512], index: 7, kind: input, shape index: {}]   ;;  %s4620_s8 = inlined_call_operand.hbm [shape: bf16[512,128], index: 8, kind: input, shape index: {}]   ;;  %s4621_s9 = inlined_call_operand.vmem [shape: f32[1,128], index: 9, kind: input, shape index: {}]   ;;  %s4622_s10 = inlined_call_operand.vmem [shape: f32[16,128], index: 10, kind: output, shape index: {}]  }
   0x1   :  { %16 = vsyncpa [#allocation5], 0 }
   0x2   :  { %17 = vsyncpa [#allocation8], 0  ;;  %s4388_s13 = smov [#allocation4]   ;;  %s4389_s15 = smov [#allocation2]  }
   0x3   :  { %s41_s14 = sshll.u32 %s4388_s13, 4  ;;  %s27_s16 = sshll.u32 %s4389_s15, 4  ;;  %s42_s14 = int_to_ptr.vmem [resolvable:$true] %s41_s14  ;;  %s4453_s16 = int_to_ptr.vmem [resolvable:$true] %s27_s16 }
   0x4   :  { %s4294_s19 = scalar_lea.hbm %s4616_s4, 12288 }
   0x5   :  { %p4295_p0 = scmp.ne.s32.totalorder %s4616_s4, %s4294_s19  ;;  %p4298_p1 = scmp.lt.u32.totalorder %s4294_s19, %s4616_s4 }
   0x7   :  { %p4300_p2 = pnand %p4298_p1, %p4295_p0 }
   0x9   :  { %4303 = shalt.err (!%p4300_p2)
}
   0xa   :  { %s4304_s24 = scalar_lea.vmem %s42_s14, 12288  ;;  %p4309_p4 = scmp.lt.s32.totalorder %s42_s14, %s42_s14 }
   0xb   :  { %p4305_p3 = scmp.ne.s32.totalorder %s42_s14, %s4304_s24  ;;  %p4310_p5 = scmp.lt.s32.totalorder %s4304_s24, %s4304_s24 }
   0xd   :  { %p4311_p6 = por %p4310_p5, %p4309_p4 }
   0xf   :  { %p4312_p7 = pnand %p4311_p6, %p4305_p3 }
  0x11   :  { %4315 = shalt.err (!%p4312_p7)
}
  0x12   :  { %s4390_s25 = smov 128   ;;  %s4391_s26 = smov 8  }
  0x13   :  { %47 = dma.hbm_to_vmem [thread:$0]  %s4616_s4, 12288, %s42_s14, [#allocation5], %s4390_s25, %s4390_s25, %s4391_s26  }
  0x14   :  { %s4316_s11 = scalar_lea.hbm %s4614_s2, 16384 }
  0x15   :  { %p4317_p8 = scmp.ne.s32.totalorder %s4614_s2, %s4316_s11  ;;  %p4320_p9 = scmp.lt.u32.totalorder %s4316_s11, %s4614_s2 }
  0x17   :  { %p4322_p10 = pnand %p4320_p9, %p4317_p8 }
  0x19   :  { %4325 = shalt.err (!%p4322_p10)
}
  0x1a   :  { %s4326_s18 = scalar_lea.vmem %s4453_s16, 16384  ;;  %p4331_p12 = scmp.lt.s32.totalorder %s4453_s16, %s4453_s16 }
  0x1b   :  { %p4327_p11 = scmp.ne.s32.totalorder %s4453_s16, %s4326_s18  ;;  %p4332_p13 = scmp.lt.s32.totalorder %s4326_s18, %s4326_s18 }
  0x1d   :  { %p4333_p0 = por %p4332_p13, %p4331_p12 }
  0x1f   :  { %p4334_p1 = pnand %p4333_p0, %p4327_p11 }
  0x21   :  { %4337 = shalt.err (!%p4334_p1)
}
  0x22   :  { %33 = dma.hbm_to_vmem [thread:$0]  %s4614_s2, 16384, %s4453_s16, [#allocation3], %s4390_s25, %s4390_s25, %s4391_s26  }
  0x23   :  { %s4392_s19 = smov [#allocation6]   ;;  %s4338_s23 = scalar_lea.hbm %s4618_s6, 16384 }
  0x24   :  { %s55_s20 = sshll.u32 %s4392_s19, 4  ;;  %p4339_p2 = scmp.ne.s32.totalorder %s4618_s6, %s4338_s23  ;;  %s56_s20 = int_to_ptr.vmem [resolvable:$true] %s55_s20 }
  0x25   :  { %p4342_p3 = scmp.lt.u32.totalorder %s4338_s23, %s4618_s6 }
  0x27   :  { %p4344_p4 = pnand %p4342_p3, %p4339_p2 }
  0x29   :  { %4347 = shalt.err (!%p4344_p4)
}
  0x2a   :  { %s4348_s30 = scalar_lea.vmem %s56_s20, 16384  ;;  %p4353_p6 = scmp.lt.s32.totalorder %s56_s20, %s56_s20 }
  0x2b   :  { %p4349_p5 = scmp.ne.s32.totalorder %s56_s20, %s4348_s30  ;;  %p4354_p7 = scmp.lt.s32.totalorder %s4348_s30, %s4348_s30 }
  0x2d   :  { %p4355_p8 = por %p4354_p7, %p4353_p6 }
  0x2f   :  { %p4356_p9 = pnand %p4355_p8, %p4349_p5 }
  0x31   :  { %4359 = shalt.err (!%p4356_p9)
}
  0x32   :  { %s4393_s2 = smov 256   ;;  %s4394_s16 = smov 16  }
  0x33   :  { %61 = dma.hbm_to_vmem [thread:$0]  %s4618_s6, 16384, %s56_s20, [#allocation5], %s4393_s2, %s4393_s2, %s4394_s16  }
  0x34   :  { %s4395_s11 = smov [#allocation7]   ;;  %s4360_s17 = scalar_lea.hbm %s4620_s8, 4096 }
  0x35   :  { %s69_s12 = sshll.u32 %s4395_s11, 4  ;;  %p4361_p10 = scmp.ne.s32.totalorder %s4620_s8, %s4360_s17  ;;  %s70_s12 = int_to_ptr.vmem [resolvable:$true] %s69_s12 }
  0x36   :  { %p4364_p11 = scmp.lt.u32.totalorder %s4360_s17, %s4620_s8 }
  0x38   :  { %p4366_p12 = pnand %p4364_p11, %p4361_p10 }
  0x3a   :  { %4369 = shalt.err (!%p4366_p12)
}
  0x3b   :  { %s4370_s21 = scalar_lea.vmem %s70_s12, 4096  ;;  %p4375_p0 = scmp.lt.s32.totalorder %s70_s12, %s70_s12 }
  0x3c   :  { %p4371_p13 = scmp.ne.s32.totalorder %s70_s12, %s4370_s21  ;;  %p4376_p1 = scmp.lt.s32.totalorder %s4370_s21, %s4370_s21 }
  0x3e   :  { %p4377_p2 = por %p4376_p1, %p4375_p0 }
  0x40   :  { %p4378_p3 = pnand %p4377_p2, %p4371_p13 }
  0x42   :  { %4381 = shalt.err (!%p4378_p3)
}
  0x43   :  { %s4396_s6 = smov 64   ;;  %s4397_s20 = smov 4  }
  0x44   :  { %75 = dma.hbm_to_vmem [thread:$0]  %s4620_s8, 4096, %s70_s12, [#allocation8], %s4396_s6, %s4396_s6, %s4397_s20  }
  0x45   :  { %4382 = dma.done.wait [#allocation3], 16384  }
  0x46   :  { %4383 = vsyncadd [#allocation3], 4294950912 }
  0x47   :  { %4384 = dma.done.wait [#allocation5], 28672  }
  0x48   :  { %4385 = vsyncadd [#allocation5], 4294938624 }
  0x49   :  { %4386 = dma.done.wait [#allocation8], 4096  }
  0x4a   :  { %4387 = vsyncadd [#allocation8], 4294963200  ;;  %v3709_v0 = vld [vmem:[#allocation2 + $0x4] ss:$8 sps:$4 sm:$0xff]   ;;  %v3713_v2 = vld [vmem:[#allocation2] ss:$8 sps:$4 sm:$0xff]  }
  0x4b   :  { %v3711_v1 = vld [vmem:[#allocation4 + $0x4] ss:$8 sps:$4 sm:$0xff]   ;;  %919 = vmatprep.subr.bf16.mxu0 %v3709_v0  ;;  %v3714_v3 = vld [vmem:[#allocation4] ss:$8 sps:$4 sm:$0xff]   ;;  %v3715_v4 = vld [vmem:[#allocation2 + $0x14] ss:$8 sps:$4 sm:$0xff]  }
  0x4c   :  { %1715 = vmatprep.subr.bf16.mxu1 %v3711_v1  ;;  %920 = vmatpush1.bf16.msra.mxu0 %v3713_v2  ;;  %v3717_v5 = vld [vmem:[#allocation4 + $0x14] ss:$8 sps:$4 sm:$0xff]   ;;  %v3719_v6 = vld [vmem:[#allocation2 + $0x10] ss:$8 sps:$4 sm:$0xff]   ;;  %v3721_v8 = vld [vmem:[#allocation2 + $0x24] ss:$8 sps:$4 sm:$0xff]  }
  0x4d   :  { %1716 = vmatpush1.bf16.msra.mxu1 %v3714_v3  ;;  %921 = vmatprep.subr.bf16.mxu0 %v3715_v4  ;;  %v3720_v7 = vld [vmem:[#allocation4 + $0x10] ss:$8 sps:$4 sm:$0xff]   ;;  %v3723_v9 = vld [vmem:[#allocation4 + $0x24] ss:$8 sps:$4 sm:$0xff]   ;;  %v3725_v10 = vld [vmem:[#allocation2 + $0x20] ss:$8 sps:$4 sm:$0xff]  }
  0x4e   :  { %1717 = vmatprep.subr.bf16.mxu1 %v3717_v5  ;;  %v3726_v11 = vld [vmem:[#allocation4 + $0x20] ss:$8 sps:$4 sm:$0xff]   ;;  %v3727_v12 = vld [vmem:[#allocation2 + $0x34] ss:$8 sps:$4 sm:$0xff]   ;;  %v3731_v14 = vld [vmem:[#allocation2 + $0x30] ss:$8 sps:$4 sm:$0xff]  }
  0x4f   :  { %v3729_v13 = vld [vmem:[#allocation4 + $0x34] ss:$8 sps:$4 sm:$0xff]   ;;  %v3732_v15 = vld [vmem:[#allocation4 + $0x30] ss:$8 sps:$4 sm:$0xff]   ;;  %v3733_v16 = vld [vmem:[#allocation2 + $0x44] ss:$8 sps:$4 sm:$0xff]  }
  0x50   :  { %922 = vmatpush1.bf16.msra.mxu0 %v3719_v6  ;;  %v3735_v17 = vld [vmem:[#allocation4 + $0x44] ss:$8 sps:$4 sm:$0xff]   ;;  %v3737_v18 = vld [vmem:[#allocation2 + $0x40] ss:$8 sps:$4 sm:$0xff]   ;;  %v3739_v20 = vld [vmem:[#allocation2 + $0x54] ss:$8 sps:$4 sm:$0xff]  }
  0x51   :  { %1718 = vmatpush1.bf16.msra.mxu1 %v3720_v7  ;;  %923 = vmatprep.subr.bf16.mxu0 %v3721_v8  ;;  %v3738_v19 = vld [vmem:[#allocation4 + $0x40] ss:$8 sps:$4 sm:$0xff]   ;;  %v3741_v21 = vld [vmem:[#allocation4 + $0x54] ss:$8 sps:$4 sm:$0xff]   ;;  %v3743_v22 = vld [vmem:[#allocation2 + $0x50] ss:$8 sps:$4 sm:$0xff]  }
  0x52   :  { %1719 = vmatprep.subr.bf16.mxu1 %v3723_v9  ;;  %v3744_v23 = vld [vmem:[#allocation4 + $0x50] ss:$8 sps:$4 sm:$0xff]   ;;  %v3745_v24 = vld [vmem:[#allocation2 + $0x64] ss:$8 sps:$4 sm:$0xff]   ;;  %v3749_v26 = vld [vmem:[#allocation2 + $0x60] ss:$8 sps:$4 sm:$0xff]  }
  0x53   :  { %v3747_v25 = vld [vmem:[#allocation4 + $0x64] ss:$8 sps:$4 sm:$0xff]   ;;  %v3750_v27 = vld [vmem:[#allocation4 + $0x60] ss:$8 sps:$4 sm:$0xff]   ;;  %v3751_v28 = vld [vmem:[#allocation2 + $0x74] ss:$8 sps:$4 sm:$0xff]  }
  0x54   :  { %924 = vmatpush1.bf16.msra.mxu0 %v3725_v10  ;;  %v3753_v29 = vld [vmem:[#allocation4 + $0x74] ss:$8 sps:$4 sm:$0xff]   ;;  %v3755_v30 = vld [vmem:[#allocation2 + $0x70] ss:$8 sps:$4 sm:$0xff]   ;;  %v3757_v32 = vld [vmem:[#allocation2 + $0x84] ss:$8 sps:$4 sm:$0xff]  }
  0x55   :  { %1720 = vmatpush1.bf16.msra.mxu1 %v3726_v11  ;;  %925 = vmatprep.subr.bf16.mxu0 %v3727_v12  ;;  %v3756_v31 = vld [vmem:[#allocation4 + $0x70] ss:$8 sps:$4 sm:$0xff]   ;;  %v3759_v33 = vld [vmem:[#allocation4 + $0x84] ss:$8 sps:$4 sm:$0xff]   ;;  %v3761_v34 = vld [vmem:[#allocation2 + $0x80] ss:$8 sps:$4 sm:$0xff]  }
  0x56   :  { %1721 = vmatprep.subr.bf16.mxu1 %v3729_v13  ;;  %v3762_v35 = vld [vmem:[#allocation4 + $0x80] ss:$8 sps:$4 sm:$0xff]   ;;  %v3763_v36 = vld [vmem:[#allocation2 + $0x94] ss:$8 sps:$4 sm:$0xff]   ;;  %v3767_v38 = vld [vmem:[#allocation2 + $0x90] ss:$8 sps:$4 sm:$0xff]  }
  0x57   :  { %v3765_v37 = vld [vmem:[#allocation4 + $0x94] ss:$8 sps:$4 sm:$0xff]   ;;  %v3768_v39 = vld [vmem:[#allocation4 + $0x90] ss:$8 sps:$4 sm:$0xff]   ;;  %v3769_v40 = vld [vmem:[#allocation2 + $0xa4] ss:$8 sps:$4 sm:$0xff]  }
  0x58   :  { %926 = vmatpush1.bf16.msra.mxu0 %v3731_v14  ;;  %v3771_v41 = vld [vmem:[#allocation4 + $0xa4] ss:$8 sps:$4 sm:$0xff]   ;;  %v3773_v42 = vld [vmem:[#allocation2 + $0xa0] ss:$8 sps:$4 sm:$0xff]   ;;  %v3775_v44 = vld [vmem:[#allocation2 + $0xb4] ss:$8 sps:$4 sm:$0xff]  }
  0x59   :  { %1722 = vmatpush1.bf16.msra.mxu1 %v3732_v15  ;;  %927 = vmatprep.subr.bf16.mxu0 %v3733_v16  ;;  %v3774_v43 = vld [vmem:[#allocation4 + $0xa0] ss:$8 sps:$4 sm:$0xff]   ;;  %v3777_v45 = vld [vmem:[#allocation4 + $0xb4] ss:$8 sps:$4 sm:$0xff]   ;;  %v3779_v46 = vld [vmem:[#allocation2 + $0xb0] ss:$8 sps:$4 sm:$0xff]  }
  0x5a   :  { %1723 = vmatprep.subr.bf16.mxu1 %v3735_v17  ;;  %v91_v47 = vld [vmem:[%s4612_s0] sm:$0xff]  ;;  %v3780_v49 = vld [vmem:[#allocation4 + $0xb0] ss:$8 sps:$4 sm:$0xff]   ;;  %v3787_v56 = vld [vmem:[#allocation2 + $0xd4] ss:$8 sps:$4 sm:$0xff]  }
  0x5b   :  { %v95_v48 = vld [vmem:[%s4612_s0 + $0x20] sm:$0xff]  ;;  %v3789_v57 = vld [vmem:[#allocation4 + $0xd4] ss:$8 sps:$4 sm:$0xff]   ;;  %v3791_v58 = vld [vmem:[#allocation2 + $0xd0] ss:$8 sps:$4 sm:$0xff]  }
  0x5c   :  { %928 = vmatpush1.bf16.msra.mxu0 %v3737_v18  ;;  %v3781_v50 = vld [vmem:[#allocation2 + $0xc4] ss:$8 sps:$4 sm:$0xff]   ;;  %v3209_v51 = vcombine.high %v91_v47, %v95_v48  ;;  %v3785_v54 = vld [vmem:[#allocation2 + $0xc0] ss:$8 sps:$4 sm:$0xff]   ;;  %v3792_v59 = vld [vmem:[#allocation4 + $0xd0] ss:$8 sps:$4 sm:$0xff]   ;;  %v3208_v6 = vcombine.low %v91_v47, %v95_v48 }
  0x5d   :  { %1724 = vmatpush1.bf16.msra.mxu1 %v3738_v19  ;;  %929 = vmatprep.subr.bf16.mxu0 %v3739_v20  ;;  %v3783_v52 = vld [vmem:[#allocation4 + $0xc4] ss:$8 sps:$4 sm:$0xff]   ;;  %v3786_v55 = vld [vmem:[#allocation4 + $0xc0] ss:$8 sps:$4 sm:$0xff]   ;;  %v3799_v0 = vld [vmem:[#allocation2 + $0xf4] ss:$8 sps:$4 sm:$0xff]  }
  0x5e   :  { %1725 = vmatprep.subr.bf16.mxu1 %v3741_v21  ;;  %v3810_v53 = vld [vmem:[%s4613_s1 + $0x4] ss:$24 sps:$4 sm:$0xff]   ;;  %951 = vmatprep.mubr.bf16.mxu0 %v3209_v51  ;;  %v3797_v62 = vld [vmem:[#allocation2 + $0xe0] ss:$8 sps:$4 sm:$0xff]   ;;  %v3803_v2 = vld [vmem:[#allocation2 + $0xf0] ss:$8 sps:$4 sm:$0xff]  }
  0x5f   :  { %1747 = vmatprep.mubr.bf16.mxu1 %v3810_v53  ;;  %v3793_v60 = vld [vmem:[#allocation2 + $0xe4] ss:$8 sps:$4 sm:$0xff]   ;;  %v3798_v63 = vld [vmem:[#allocation4 + $0xe0] ss:$8 sps:$4 sm:$0xff]   ;;  %v3801_v1 = vld [vmem:[#allocation4 + $0xf4] ss:$8 sps:$4 sm:$0xff]  }
  0x60   :  { %930 = vmatpush1.bf16.msra.mxu0 %v3743_v22  ;;  %v3795_v61 = vld [vmem:[#allocation4 + $0xe4] ss:$8 sps:$4 sm:$0xff]   ;;  %v3804_v3 = vld [vmem:[#allocation4 + $0xf0] ss:$8 sps:$4 sm:$0xff]   ;;  %v3805_v8 = vld [vmem:[#allocation2 + $0x100] ss:$8 sps:$4 sm:$0xff]  }
  0x61   :  { %1726 = vmatpush1.bf16.msra.mxu1 %v3744_v23  ;;  %931 = vmatprep.subr.bf16.mxu0 %v3745_v24  ;;  %v3807_v4 = vld [vmem:[#allocation2 + $0x104] ss:$8 sps:$4 sm:$0xff]   ;;  %v3808_v7 = vld [vmem:[%s4613_s1] ss:$24 sps:$4 sm:$0xff]   ;;  %v3816_v10 = vld [vmem:[#allocation2 + $0x114] ss:$8 sps:$4 sm:$0xff]  }
  0x62   :  { %1727 = vmatprep.subr.bf16.mxu1 %v3747_v25  ;;  %v3813_v5 = vld [vmem:[#allocation4 + $0x104] ss:$8 sps:$4 sm:$0xff]   ;;  %v3811_v9 = vld [vmem:[#allocation4 + $0x100] ss:$8 sps:$4 sm:$0xff]   ;;  %v3819_v11 = vld [vmem:[#allocation4 + $0x114] ss:$8 sps:$4 sm:$0xff]  }
  0x63   :  { %v3814_v12 = vld [vmem:[#allocation2 + $0x110] ss:$8 sps:$4 sm:$0xff]   ;;  %v3822_v14 = vld [vmem:[#allocation2 + $0x124] ss:$8 sps:$4 sm:$0xff]   ;;  %v3820_v16 = vld [vmem:[#allocation2 + $0x120] ss:$8 sps:$4 sm:$0xff]  }
  0x64   :  { %932 = vmatpush1.bf16.msra.mxu0 %v3749_v26  ;;  %v3817_v13 = vld [vmem:[#allocation4 + $0x110] ss:$8 sps:$4 sm:$0xff]   ;;  %v3825_v15 = vld [vmem:[#allocation4 + $0x124] ss:$8 sps:$4 sm:$0xff]   ;;  %v3823_v17 = vld [vmem:[#allocation4 + $0x120] ss:$8 sps:$4 sm:$0xff]  }
  0x65   :  { %1728 = vmatpush1.bf16.msra.mxu1 %v3750_v27  ;;  %933 = vmatprep.subr.bf16.mxu0 %v3751_v28  ;;  %v3828_v18 = vld [vmem:[#allocation2 + $0x134] ss:$8 sps:$4 sm:$0xff]   ;;  %v3826_v20 = vld [vmem:[#allocation2 + $0x130] ss:$8 sps:$4 sm:$0xff]   ;;  %v3834_v22 = vld [vmem:[#allocation2 + $0x144] ss:$8 sps:$4 sm:$0xff]  }
  0x66   :  { %1729 = vmatprep.subr.bf16.mxu1 %v3753_v29  ;;  %v3831_v19 = vld [vmem:[#allocation4 + $0x134] ss:$8 sps:$4 sm:$0xff]   ;;  %v3829_v21 = vld [vmem:[#allocation4 + $0x130] ss:$8 sps:$4 sm:$0xff]   ;;  %v3837_v23 = vld [vmem:[#allocation4 + $0x144] ss:$8 sps:$4 sm:$0xff]  }
  0x67   :  { %v3832_v24 = vld [vmem:[#allocation2 + $0x140] ss:$8 sps:$4 sm:$0xff]   ;;  %v3840_v26 = vld [vmem:[#allocation2 + $0x154] ss:$8 sps:$4 sm:$0xff]   ;;  %v3838_v28 = vld [vmem:[#allocation2 + $0x150] ss:$8 sps:$4 sm:$0xff]  }
  0x68   :  { %934 = vmatpush1.bf16.msra.mxu0 %v3755_v30  ;;  %v3835_v25 = vld [vmem:[#allocation4 + $0x140] ss:$8 sps:$4 sm:$0xff]   ;;  %v3843_v27 = vld [vmem:[#allocation4 + $0x154] ss:$8 sps:$4 sm:$0xff]   ;;  %v3841_v29 = vld [vmem:[#allocation4 + $0x150] ss:$8 sps:$4 sm:$0xff]  }
  0x69   :  { %1730 = vmatpush1.bf16.msra.mxu1 %v3756_v31  ;;  %935 = vmatprep.subr.bf16.mxu0 %v3757_v32  ;;  %v3846_v30 = vld [vmem:[#allocation2 + $0x164] ss:$8 sps:$4 sm:$0xff]   ;;  %v3844_v32 = vld [vmem:[#allocation2 + $0x160] ss:$8 sps:$4 sm:$0xff]   ;;  %v3867_v47 = vld [vmem:[#allocation4 + $0x194] ss:$8 sps:$4 sm:$0xff]  }
  0x6a   :  { %1731 = vmatprep.subr.bf16.mxu1 %v3759_v33  ;;  %v3849_v31 = vld [vmem:[#allocation4 + $0x164] ss:$8 sps:$4 sm:$0xff]   ;;  %v3847_v33 = vld [vmem:[#allocation4 + $0x160] ss:$8 sps:$4 sm:$0xff]   ;;  %v3862_v48 = vld [vmem:[#allocation2 + $0x190] ss:$8 sps:$4 sm:$0xff]  }
  0x6b   :  { %v3873_v51 = vld [vmem:[#allocation4 + $0x1a4] ss:$8 sps:$4 sm:$0xff]   ;;  %v3871_v53 = vld [vmem:[#allocation4 + $0x1a0] ss:$8 sps:$4 sm:$0xff]  }
  0x6c   :  { %936 = vmatpush1.bf16.msra.mxu0 %v3761_v34  ;;  %v4523_v34 = vld [vmem:[%s4612_s0 + $0x8] sm:$0xff] }
  0x6d   :  { %1732 = vmatpush1.bf16.msra.mxu1 %v3762_v35  ;;  %937 = vmatprep.subr.bf16.mxu0 %v3763_v36  ;;  %v4528_v35 = vld [vmem:[%s4612_s0 + $0x28] sm:$0xff]  ;;  %v3852_v36 = vld [vmem:[#allocation2 + $0x174] ss:$8 sps:$4 sm:$0xff]  }
  0x6e   :  { %1733 = vmatprep.subr.bf16.mxu1 %v3765_v37  ;;  %v3211_v37 = vcombine.high %v4523_v34, %v4528_v35 }
  0x70   :  { %938 = vmatpush1.bf16.msra.mxu0 %v3767_v38  ;;  %v3855_v38 = vld [vmem:[#allocation4 + $0x174] ss:$8 sps:$4 sm:$0xff]  }
  0x71   :  { %1734 = vmatpush1.bf16.msra.mxu1 %v3768_v39  ;;  %939 = vmatprep.subr.bf16.mxu0 %v3769_v40  ;;  %v3909_v39 = vld [vmem:[%s4613_s1 + $0xc] ss:$24 sps:$4 sm:$0xff]   ;;  %v3850_v40 = vld [vmem:[#allocation2 + $0x170] ss:$8 sps:$4 sm:$0xff]  }
  0x72   :  { %1735 = vmatprep.subr.bf16.mxu1 %v3771_v41  ;;  %v3853_v41 = vld [vmem:[#allocation4 + $0x170] ss:$8 sps:$4 sm:$0xff]  }
  0x74   :  { %940 = vmatpush1.bf16.msra.mxu0 %v3773_v42  ;;  %v3858_v42 = vld [vmem:[#allocation2 + $0x184] ss:$8 sps:$4 sm:$0xff]  }
  0x75   :  { %1736 = vmatpush1.bf16.msra.mxu1 %v3774_v43  ;;  %941 = vmatprep.subr.bf16.mxu0 %v3775_v44  ;;  %v3861_v43 = vld [vmem:[#allocation4 + $0x184] ss:$8 sps:$4 sm:$0xff]   ;;  %v3856_v44 = vld [vmem:[#allocation2 + $0x180] ss:$8 sps:$4 sm:$0xff]  }
  0x76   :  { %1737 = vmatprep.subr.bf16.mxu1 %v3777_v45  ;;  %v3859_v45 = vld [vmem:[#allocation4 + $0x180] ss:$8 sps:$4 sm:$0xff]  }
  0x78   :  { %942 = vmatpush1.bf16.msra.mxu0 %v3779_v46  ;;  %v3864_v46 = vld [vmem:[#allocation2 + $0x194] ss:$8 sps:$4 sm:$0xff]  }
  0x79   :  { %1738 = vmatpush1.bf16.msra.mxu1 %v3780_v49  ;;  %943 = vmatprep.subr.bf16.mxu0 %v3781_v50  ;;  %v3865_v49 = vld [vmem:[#allocation4 + $0x190] ss:$8 sps:$4 sm:$0xff]   ;;  %v3870_v50 = vld [vmem:[#allocation2 + $0x1a4] ss:$8 sps:$4 sm:$0xff]  }
  0x7a   :  { %1739 = vmatprep.subr.bf16.mxu1 %v3783_v52  ;;  %v3868_v52 = vld [vmem:[#allocation2 + $0x1a0] ss:$8 sps:$4 sm:$0xff]  }
  0x7c   :  { %944 = vmatpush1.bf16.msra.mxu0 %v3785_v54  ;;  %v3876_v54 = vld [vmem:[#allocation2 + $0x1b4] ss:$8 sps:$4 sm:$0xff]  }
  0x7d   :  { %1740 = vmatpush1.bf16.msra.mxu1 %v3786_v55  ;;  %945 = vmatprep.subr.bf16.mxu0 %v3787_v56  ;;  %v3879_v55 = vld [vmem:[#allocation4 + $0x1b4] ss:$8 sps:$4 sm:$0xff]   ;;  %v3874_v56 = vld [vmem:[#allocation2 + $0x1b0] ss:$8 sps:$4 sm:$0xff]  }
  0x7e   :  { %1741 = vmatprep.subr.bf16.mxu1 %v3789_v57  ;;  %v3877_v57 = vld [vmem:[#allocation4 + $0x1b0] ss:$8 sps:$4 sm:$0xff]  }
  0x80   :  { %946 = vmatpush1.bf16.msra.mxu0 %v3791_v58  ;;  %v3882_v58 = vld [vmem:[#allocation2 + $0x1c4] ss:$8 sps:$4 sm:$0xff]  }
  0x81   :  { %1742 = vmatpush1.bf16.msra.mxu1 %v3792_v59  ;;  %947 = vmatprep.subr.bf16.mxu0 %v3793_v60  ;;  %v3885_v59 = vld [vmem:[#allocation4 + $0x1c4] ss:$8 sps:$4 sm:$0xff]   ;;  %v3880_v60 = vld [vmem:[#allocation2 + $0x1c0] ss:$8 sps:$4 sm:$0xff]  }
  0x82   :  { %1743 = vmatprep.subr.bf16.mxu1 %v3795_v61  ;;  %v3883_v61 = vld [vmem:[#allocation4 + $0x1c0] ss:$8 sps:$4 sm:$0xff]  }
  0x84   :  { %948 = vmatpush1.bf16.msra.mxu0 %v3797_v62  ;;  %v3888_v62 = vld [vmem:[#allocation2 + $0x1d4] ss:$8 sps:$4 sm:$0xff]  }
  0x85   :  { %1744 = vmatpush1.bf16.msra.mxu1 %v3798_v63  ;;  %949 = vmatprep.subr.bf16.mxu0 %v3799_v0  ;;  %v3891_v63 = vld [vmem:[#allocation4 + $0x1d4] ss:$8 sps:$4 sm:$0xff]   ;;  %v3886_v0 = vld [vmem:[#allocation2 + $0x1d0] ss:$8 sps:$4 sm:$0xff]  }
  0x86   :  { %1745 = vmatprep.subr.bf16.mxu1 %v3801_v1  ;;  %v3889_v1 = vld [vmem:[#allocation4 + $0x1d0] ss:$8 sps:$4 sm:$0xff]  }
  0x88   :  { %950 = vmatpush1.bf16.msra.mxu0 %v3803_v2  ;;  %v3894_v2 = vld [vmem:[#allocation2 + $0x1e4] ss:$8 sps:$4 sm:$0xff]  }
  0x89   :  { %1746 = vmatpush1.bf16.msra.mxu1 %v3804_v3  ;;  %962 = vmatprep.subr.bf16.mxu0 %v3807_v4  ;;  %v3897_v3 = vld [vmem:[#allocation4 + $0x1e4] ss:$8 sps:$4 sm:$0xff]   ;;  %v3892_v4 = vld [vmem:[#allocation2 + $0x1e0] ss:$8 sps:$4 sm:$0xff]  }
  0x8a   :  { %1758 = vmatprep.subr.bf16.mxu1 %v3813_v5  ;;  %v3895_v5 = vld [vmem:[#allocation4 + $0x1e0] ss:$8 sps:$4 sm:$0xff]  }
  0x8b   :  { %952 = vmatmul.mubr.bf16.vlgmr.msra.gmra.mrb[0].mxu0 %v3208_v6  ;;  %v3900_v6 = vld [vmem:[#allocation2 + $0x1f4] ss:$8 sps:$4 sm:$0xff]  }
  0x8c   :  { %1748 = vmatmul.mubr.bf16.vlgmr.msra.gmra.mrb[0].mxu1 %v3808_v7  ;;  %963 = vmatpush1.bf16.msra.mxu0 %v3805_v8  ;;  %v3903_v7 = vld [vmem:[#allocation4 + $0x1f4] ss:$8 sps:$4 sm:$0xff]   ;;  %v3898_v8 = vld [vmem:[#allocation2 + $0x1f0] ss:$8 sps:$4 sm:$0xff]  }
  0x8d   :  { %1759 = vmatpush1.bf16.msra.mxu1 %v3811_v9  ;;  %964 = vmatprep.subr.bf16.mxu0 %v3816_v10  ;;  %v3901_v9 = vld [vmem:[#allocation4 + $0x1f0] ss:$8 sps:$4 sm:$0xff]   ;;  %v3906_v10 = vld [vmem:[#allocation2 + $0x204] ss:$8 sps:$4 sm:$0xff]  }
  0x8e   :  { %1760 = vmatprep.subr.bf16.mxu1 %v3819_v11  ;;  %994 = vmatprep.mubr.bf16.mxu0 %v3211_v37  ;;  %v3912_v11 = vld [vmem:[#allocation4 + $0x204] ss:$8 sps:$4 sm:$0xff]   ;;  %v3942_v37 = vld [vmem:[#allocation4 + $0x254] ss:$8 sps:$4 sm:$0xff]  }
  0x8f   :  { %1790 = vmatprep.mubr.bf16.mxu1 %v3909_v39  ;;  %v3940_v39 = vld [vmem:[#allocation4 + $0x250] ss:$8 sps:$4 sm:$0xff]  }
  0x90   :  { %965 = vmatpush1.bf16.msra.mxu0 %v3814_v12  ;;  %v3904_v12 = vld [vmem:[#allocation2 + $0x200] ss:$8 sps:$4 sm:$0xff]  }
  0x91   :  { %1761 = vmatpush1.bf16.msra.mxu1 %v3817_v13  ;;  %966 = vmatprep.subr.bf16.mxu0 %v3822_v14  ;;  %v3210_v13 = vcombine.low %v4523_v34, %v4528_v35  ;;  %v3907_v14 = vld [vmem:[%s4613_s1 + $0x8] ss:$24 sps:$4 sm:$0xff]  }
  0x92   :  { %1762 = vmatprep.subr.bf16.mxu1 %v3825_v15  ;;  %v3910_v15 = vld [vmem:[#allocation4 + $0x200] ss:$8 sps:$4 sm:$0xff]  }
  0x93   :  { %v3931_v34 = vld [vmem:[#allocation2 + $0x240] ss:$8 sps:$4 sm:$0xff]  }
  0x94   :  { %967 = vmatpush1.bf16.msra.mxu0 %v3820_v16  ;;  %v3915_v16 = vld [vmem:[#allocation2 + $0x214] ss:$8 sps:$4 sm:$0xff]   ;;  %v3934_v35 = vld [vmem:[#allocation4 + $0x240] ss:$8 sps:$4 sm:$0xff]  }
  0x95   :  { %1763 = vmatpush1.bf16.msra.mxu1 %v3823_v17  ;;  %968 = vmatprep.subr.bf16.mxu0 %v3828_v18  ;;  %v3918_v17 = vld [vmem:[#allocation4 + $0x214] ss:$8 sps:$4 sm:$0xff]   ;;  %v3913_v18 = vld [vmem:[#allocation2 + $0x210] ss:$8 sps:$4 sm:$0xff]  }
  0x96   :  { %1764 = vmatprep.subr.bf16.mxu1 %v3831_v19  ;;  %v3916_v19 = vld [vmem:[#allocation4 + $0x210] ss:$8 sps:$4 sm:$0xff]  }
  0x98   :  { %969 = vmatpush1.bf16.msra.mxu0 %v3826_v20  ;;  %v3921_v20 = vld [vmem:[#allocation2 + $0x224] ss:$8 sps:$4 sm:$0xff]  }
  0x99   :  { %1765 = vmatpush1.bf16.msra.mxu1 %v3829_v21  ;;  %970 = vmatprep.subr.bf16.mxu0 %v3834_v22  ;;  %v3924_v21 = vld [vmem:[#allocation4 + $0x224] ss:$8 sps:$4 sm:$0xff]  }
  0x9a   :  { %1766 = vmatprep.subr.bf16.mxu1 %v3837_v23  ;;  %v4005_v22 = vld [vmem:[%s4613_s1 + $0x14] ss:$24 sps:$4 sm:$0xff]  }
  0x9b   :  { %v4546_v23 = vld [vmem:[%s4612_s0 + $0x10] sm:$0xff] }
  0x9c   :  { %971 = vmatpush1.bf16.msra.mxu0 %v3832_v24  ;;  %v4551_v24 = vld [vmem:[%s4612_s0 + $0x30] sm:$0xff] }
  0x9d   :  { %1767 = vmatpush1.bf16.msra.mxu1 %v3835_v25  ;;  %972 = vmatprep.subr.bf16.mxu0 %v3840_v26  ;;  %v3213_v25 = vcombine.high %v4546_v23, %v4551_v24  ;;  %v3919_v26 = vld [vmem:[#allocation2 + $0x220] ss:$8 sps:$4 sm:$0xff]  }
  0x9e   :  { %1768 = vmatprep.subr.bf16.mxu1 %v3843_v27  ;;  %v3922_v27 = vld [vmem:[#allocation4 + $0x220] ss:$8 sps:$4 sm:$0xff]  }
  0xa0   :  { %973 = vmatpush1.bf16.msra.mxu0 %v3838_v28  ;;  %v3927_v28 = vld [vmem:[#allocation2 + $0x234] ss:$8 sps:$4 sm:$0xff]  }
  0xa1   :  { %1769 = vmatpush1.bf16.msra.mxu1 %v3841_v29  ;;  %974 = vmatprep.subr.bf16.mxu0 %v3846_v30  ;;  %v3930_v29 = vld [vmem:[#allocation4 + $0x234] ss:$8 sps:$4 sm:$0xff]   ;;  %v3925_v30 = vld [vmem:[#allocation2 + $0x230] ss:$8 sps:$4 sm:$0xff]  }
  0xa2   :  { %1770 = vmatprep.subr.bf16.mxu1 %v3849_v31  ;;  %v3928_v31 = vld [vmem:[#allocation4 + $0x230] ss:$8 sps:$4 sm:$0xff]  }
  0xa4   :  { %975 = vmatpush1.bf16.msra.mxu0 %v3844_v32  ;;  %v3933_v32 = vld [vmem:[#allocation2 + $0x244] ss:$8 sps:$4 sm:$0xff]  }
  0xa5   :  { %1771 = vmatpush1.bf16.msra.mxu1 %v3847_v33  ;;  %976 = vmatprep.subr.bf16.mxu0 %v3852_v36  ;;  %v3936_v33 = vld [vmem:[#allocation4 + $0x244] ss:$8 sps:$4 sm:$0xff]   ;;  %v3939_v36 = vld [vmem:[#allocation2 + $0x254] ss:$8 sps:$4 sm:$0xff]  }
  0xa6   :  { %1772 = vmatprep.subr.bf16.mxu1 %v3855_v38  ;;  %v3937_v38 = vld [vmem:[#allocation2 + $0x250] ss:$8 sps:$4 sm:$0xff]  }
  0xa8   :  { %977 = vmatpush1.bf16.msra.mxu0 %v3850_v40  ;;  %v3945_v40 = vld [vmem:[#allocation2 + $0x264] ss:$8 sps:$4 sm:$0xff]  }
  0xa9   :  { %1773 = vmatpush1.bf16.msra.mxu1 %v3853_v41  ;;  %978 = vmatprep.subr.bf16.mxu0 %v3858_v42  ;;  %v3948_v41 = vld [vmem:[#allocation4 + $0x264] ss:$8 sps:$4 sm:$0xff]   ;;  %v3943_v42 = vld [vmem:[#allocation2 + $0x260] ss:$8 sps:$4 sm:$0xff]  }
  0xaa   :  { %1774 = vmatprep.subr.bf16.mxu1 %v3861_v43  ;;  %v3946_v43 = vld [vmem:[#allocation4 + $0x260] ss:$8 sps:$4 sm:$0xff]  }
  0xac   :  { %979 = vmatpush1.bf16.msra.mxu0 %v3856_v44  ;;  %v3951_v44 = vld [vmem:[#allocation2 + $0x274] ss:$8 sps:$4 sm:$0xff]  }
  0xad   :  { %1775 = vmatpush1.bf16.msra.mxu1 %v3859_v45  ;;  %980 = vmatprep.subr.bf16.mxu0 %v3864_v46  ;;  %v3954_v45 = vld [vmem:[#allocation4 + $0x274] ss:$8 sps:$4 sm:$0xff]   ;;  %v3949_v46 = vld [vmem:[#allocation2 + $0x270] ss:$8 sps:$4 sm:$0xff]  }
  0xae   :  { %1776 = vmatprep.subr.bf16.mxu1 %v3867_v47  ;;  %v3952_v47 = vld [vmem:[#allocation4 + $0x270] ss:$8 sps:$4 sm:$0xff]  }
  0xb0   :  { %981 = vmatpush1.bf16.msra.mxu0 %v3862_v48  ;;  %v3957_v48 = vld [vmem:[#allocation2 + $0x284] ss:$8 sps:$4 sm:$0xff]  }
  0xb1   :  { %1777 = vmatpush1.bf16.msra.mxu1 %v3865_v49  ;;  %982 = vmatprep.subr.bf16.mxu0 %v3870_v50  ;;  %v3960_v49 = vld [vmem:[#allocation4 + $0x284] ss:$8 sps:$4 sm:$0xff]   ;;  %v3955_v50 = vld [vmem:[#allocation2 + $0x280] ss:$8 sps:$4 sm:$0xff]  }
  0xb2   :  { %1778 = vmatprep.subr.bf16.mxu1 %v3873_v51  ;;  %v3958_v51 = vld [vmem:[#allocation4 + $0x280] ss:$8 sps:$4 sm:$0xff]  }
  0xb4   :  { %983 = vmatpush1.bf16.msra.mxu0 %v3868_v52  ;;  %v3963_v52 = vld [vmem:[#allocation2 + $0x294] ss:$8 sps:$4 sm:$0xff]  }
  0xb5   :  { %1779 = vmatpush1.bf16.msra.mxu1 %v3871_v53  ;;  %984 = vmatprep.subr.bf16.mxu0 %v3876_v54  ;;  %v3966_v53 = vld [vmem:[#allocation4 + $0x294] ss:$8 sps:$4 sm:$0xff]   ;;  %v3961_v54 = vld [vmem:[#allocation2 + $0x290] ss:$8 sps:$4 sm:$0xff]  }
  0xb6   :  { %1780 = vmatprep.subr.bf16.mxu1 %v3879_v55  ;;  %v3964_v55 = vld [vmem:[#allocation4 + $0x290] ss:$8 sps:$4 sm:$0xff]  }
  0xb8   :  { %985 = vmatpush1.bf16.msra.mxu0 %v3874_v56  ;;  %v3969_v56 = vld [vmem:[#allocation2 + $0x2a4] ss:$8 sps:$4 sm:$0xff]  }
  0xb9   :  { %1781 = vmatpush1.bf16.msra.mxu1 %v3877_v57  ;;  %986 = vmatprep.subr.bf16.mxu0 %v3882_v58  ;;  %v3972_v57 = vld [vmem:[#allocation4 + $0x2a4] ss:$8 sps:$4 sm:$0xff]   ;;  %v3967_v58 = vld [vmem:[#allocation2 + $0x2a0] ss:$8 sps:$4 sm:$0xff]  }
  0xba   :  { %1782 = vmatprep.subr.bf16.mxu1 %v3885_v59  ;;  %v3970_v59 = vld [vmem:[#allocation4 + $0x2a0] ss:$8 sps:$4 sm:$0xff]  }
  0xbc   :  { %987 = vmatpush1.bf16.msra.mxu0 %v3880_v60  ;;  %v3975_v60 = vld [vmem:[#allocation2 + $0x2b4] ss:$8 sps:$4 sm:$0xff]  }
  0xbd   :  { %1783 = vmatpush1.bf16.msra.mxu1 %v3883_v61  ;;  %988 = vmatprep.subr.bf16.mxu0 %v3888_v62  ;;  %v3978_v61 = vld [vmem:[#allocation4 + $0x2b4] ss:$8 sps:$4 sm:$0xff]   ;;  %v3973_v62 = vld [vmem:[#allocation2 + $0x2b0] ss:$8 sps:$4 sm:$0xff]  }
  0xbe   :  { %1784 = vmatprep.subr.bf16.mxu1 %v3891_v63  ;;  %v3976_v63 = vld [vmem:[#allocation4 + $0x2b0] ss:$8 sps:$4 sm:$0xff]  }
  0xc0   :  { %989 = vmatpush1.bf16.msra.mxu0 %v3886_v0  ;;  %v3981_v0 = vld [vmem:[#allocation2 + $0x2c4] ss:$8 sps:$4 sm:$0xff]  }
  0xc1   :  { %1785 = vmatpush1.bf16.msra.mxu1 %v3889_v1  ;;  %990 = vmatprep.subr.bf16.mxu0 %v3894_v2  ;;  %v3984_v1 = vld [vmem:[#allocation4 + $0x2c4] ss:$8 sps:$4 sm:$0xff]   ;;  %v3979_v2 = vld [vmem:[#allocation2 + $0x2c0] ss:$8 sps:$4 sm:$0xff]  }
  0xc2   :  { %1786 = vmatprep.subr.bf16.mxu1 %v3897_v3  ;;  %v3982_v3 = vld [vmem:[#allocation4 + $0x2c0] ss:$8 sps:$4 sm:$0xff]  }
  0xc4   :  { %991 = vmatpush1.bf16.msra.mxu0 %v3892_v4  ;;  %v3987_v4 = vld [vmem:[#allocation2 + $0x2d4] ss:$8 sps:$4 sm:$0xff]  }
  0xc5   :  { %1787 = vmatpush1.bf16.msra.mxu1 %v3895_v5  ;;  %992 = vmatprep.subr.bf16.mxu0 %v3900_v6  ;;  %v3990_v5 = vld [vmem:[#allocation4 + $0x2d4] ss:$8 sps:$4 sm:$0xff]   ;;  %v3985_v6 = vld [vmem:[#allocation2 + $0x2d0] ss:$8 sps:$4 sm:$0xff]  }
  0xc6   :  { %1788 = vmatprep.subr.bf16.mxu1 %v3903_v7  ;;  %v3988_v7 = vld [vmem:[#allocation4 + $0x2d0] ss:$8 sps:$4 sm:$0xff]  }
  0xc8   :  { %993 = vmatpush1.bf16.msra.mxu0 %v3898_v8  ;;  %v3993_v8 = vld [vmem:[#allocation2 + $0x2e4] ss:$8 sps:$4 sm:$0xff]  }
  0xc9   :  { %1789 = vmatpush1.bf16.msra.mxu1 %v3901_v9  ;;  %1005 = vmatprep.subr.bf16.mxu0 %v3906_v10  ;;  %v3996_v9 = vld [vmem:[#allocation4 + $0x2e4] ss:$8 sps:$4 sm:$0xff]   ;;  %v3991_v10 = vld [vmem:[#allocation2 + $0x2e0] ss:$8 sps:$4 sm:$0xff]  }
  0xca   :  { %1801 = vmatprep.subr.bf16.mxu1 %v3912_v11  ;;  %v3994_v11 = vld [vmem:[#allocation4 + $0x2e0] ss:$8 sps:$4 sm:$0xff]  }
  0xcb   :  { %995 = vmatmul.mubr.bf16.vlgmr.msra.gmra.mrb[0].mxu0 %v3210_v13  ;;  %v4002_v13 = vld [vmem:[#allocation4 + $0x2f4] ss:$8 sps:$4 sm:$0xff]  }
  0xcc   :  { %1791 = vmatmul.mubr.bf16.vlgmr.msra.gmra.mrb[0].mxu1 %v3907_v14  ;;  %1006 = vmatpush1.bf16.msra.mxu0 %v3904_v12  ;;  %v3999_v12 = vld [vmem:[#allocation2 + $0x2f4] ss:$8 sps:$4 sm:$0xff]   ;;  %v3997_v14 = vld [vmem:[#allocation2 + $0x2f0] ss:$8 sps:$4 sm:$0xff]  }
  0xcd   :  { %1802 = vmatpush1.bf16.msra.mxu1 %v3910_v15  ;;  %1007 = vmatprep.subr.bf16.mxu0 %v3915_v16  ;;  %v4000_v15 = vld [vmem:[#allocation4 + $0x2f0] ss:$8 sps:$4 sm:$0xff]   ;;  %v4008_v16 = vld [vmem:[#allocation2 + $0x304] ss:$8 sps:$4 sm:$0xff]  }
  0xce   :  { %1803 = vmatprep.subr.bf16.mxu1 %v3918_v17  ;;  %1833 = vmatprep.mubr.bf16.mxu1 %v4005_v22  ;;  %v4558_v17 = vld [vmem:[%s4612_s0 + $0x18] sm:$0xff] }
  0xcf   :  { %1037 = vmatprep.mubr.bf16.mxu0 %v3213_v25  ;;  %v4011_v22 = vld [vmem:[#allocation2 + $0x314] ss:$8 sps:$4 sm:$0xff]  }
  0xd0   :  { %1008 = vmatpush1.bf16.msra.mxu0 %v3913_v18  ;;  %v4563_v18 = vld [vmem:[%s4612_s0 + $0x38] sm:$0xff] }
  0xd1   :  { %1804 = vmatpush1.bf16.msra.mxu1 %v3916_v19  ;;  %1009 = vmatprep.subr.bf16.mxu0 %v3921_v20  ;;  %v4003_v19 = vld [vmem:[%s4613_s1 + $0x10] ss:$24 sps:$4 sm:$0xff]   ;;  %v3215_v25 = vcombine.high %v4558_v17, %v4563_v18 }
  0xd2   :  { %1805 = vmatprep.subr.bf16.mxu1 %v3924_v21  ;;  %v4006_v20 = vld [vmem:[#allocation2 + $0x300] ss:$8 sps:$4 sm:$0xff]   ;;  %v3212_v21 = vcombine.low %v4546_v23, %v4551_v24  ;;  %v4020_v23 = vld [vmem:[#allocation2 + $0x344] ss:$8 sps:$4 sm:$0xff]  }
  0xd3   :  { %v4018_v24 = vld [vmem:[#allocation2 + $0x340] ss:$8 sps:$4 sm:$0xff]  }
  0xd4   :  { %1010 = vmatpush1.bf16.msra.mxu0 %v3919_v26  ;;  %v4009_v26 = vld [vmem:[#allocation2 + $0x310] ss:$8 sps:$4 sm:$0xff]  }
  0xd5   :  { %1806 = vmatpush1.bf16.msra.mxu1 %v3922_v27  ;;  %1011 = vmatprep.subr.bf16.mxu0 %v3927_v28  ;;  %v4014_v27 = vld [vmem:[#allocation2 + $0x324] ss:$8 sps:$4 sm:$0xff]   ;;  %v4012_v28 = vld [vmem:[#allocation2 + $0x320] ss:$8 sps:$4 sm:$0xff]  }
  0xd6   :  { %1807 = vmatprep.subr.bf16.mxu1 %v3930_v29  ;;  %v4017_v29 = vld [vmem:[#allocation2 + $0x334] ss:$8 sps:$4 sm:$0xff]  }
  0xd8   :  { %1012 = vmatpush1.bf16.msra.mxu0 %v3925_v30  ;;  %v4015_v30 = vld [vmem:[#allocation2 + $0x330] ss:$8 sps:$4 sm:$0xff]  }
  0xd9   :  { %1808 = vmatpush1.bf16.msra.mxu1 %v3928_v31  ;;  %1013 = vmatprep.subr.bf16.mxu0 %v3933_v32  ;;  %v4023_v31 = vld [vmem:[#allocation2 + $0x354] ss:$8 sps:$4 sm:$0xff]   ;;  %v4021_v32 = vld [vmem:[#allocation2 + $0x350] ss:$8 sps:$4 sm:$0xff]  }
  0xda   :  { %1809 = vmatprep.subr.bf16.mxu1 %v3936_v33  ;;  %v4026_v33 = vld [vmem:[#allocation2 + $0x364] ss:$8 sps:$4 sm:$0xff]  }
  0xdc   :  { %1014 = vmatpush1.bf16.msra.mxu0 %v3931_v34  ;;  %v4024_v34 = vld [vmem:[#allocation2 + $0x360] ss:$8 sps:$4 sm:$0xff]  }
  0xdd   :  { %1810 = vmatpush1.bf16.msra.mxu1 %v3934_v35  ;;  %1015 = vmatprep.subr.bf16.mxu0 %v3939_v36  ;;  %v4029_v35 = vld [vmem:[#allocation2 + $0x374] ss:$8 sps:$4 sm:$0xff]   ;;  %v4027_v36 = vld [vmem:[#allocation2 + $0x370] ss:$8 sps:$4 sm:$0xff]  }
  0xde   :  { %1811 = vmatprep.subr.bf16.mxu1 %v3942_v37  ;;  %v4032_v37 = vld [vmem:[#allocation2 + $0x384] ss:$8 sps:$4 sm:$0xff]  }
  0xe0   :  { %1016 = vmatpush1.bf16.msra.mxu0 %v3937_v38  ;;  %v4030_v38 = vld [vmem:[#allocation2 + $0x380] ss:$8 sps:$4 sm:$0xff]  }
  0xe1   :  { %1812 = vmatpush1.bf16.msra.mxu1 %v3940_v39  ;;  %1017 = vmatprep.subr.bf16.mxu0 %v3945_v40  ;;  %v4035_v39 = vld [vmem:[#allocation2 + $0x394] ss:$8 sps:$4 sm:$0xff]   ;;  %v4033_v40 = vld [vmem:[#allocation2 + $0x390] ss:$8 sps:$4 sm:$0xff]  }
  0xe2   :  { %1813 = vmatprep.subr.bf16.mxu1 %v3948_v41  ;;  %v4038_v41 = vld [vmem:[#allocation2 + $0x3a4] ss:$8 sps:$4 sm:$0xff]  }
  0xe4   :  { %1018 = vmatpush1.bf16.msra.mxu0 %v3943_v42  ;;  %v4036_v42 = vld [vmem:[#allocation2 + $0x3a0] ss:$8 sps:$4 sm:$0xff]  }
  0xe5   :  { %1814 = vmatpush1.bf16.msra.mxu1 %v3946_v43  ;;  %1019 = vmatprep.subr.bf16.mxu0 %v3951_v44  ;;  %v4041_v43 = vld [vmem:[#allocation2 + $0x3b4] ss:$8 sps:$4 sm:$0xff]   ;;  %v4039_v44 = vld [vmem:[#allocation2 + $0x3b0] ss:$8 sps:$4 sm:$0xff]  }
  0xe6   :  { %1815 = vmatprep.subr.bf16.mxu1 %v3954_v45  ;;  %v4044_v45 = vld [vmem:[#allocation2 + $0x3c4] ss:$8 sps:$4 sm:$0xff]  }
  0xe8   :  { %1020 = vmatpush1.bf16.msra.mxu0 %v3949_v46  ;;  %v4042_v46 = vld [vmem:[#allocation2 + $0x3c0] ss:$8 sps:$4 sm:$0xff]  }
  0xe9   :  { %1816 = vmatpush1.bf16.msra.mxu1 %v3952_v47  ;;  %1021 = vmatprep.subr.bf16.mxu0 %v3957_v48  ;;  %v4047_v47 = vld [vmem:[#allocation2 + $0x3d4] ss:$8 sps:$4 sm:$0xff]   ;;  %v4045_v48 = vld [vmem:[#allocation2 + $0x3d0] ss:$8 sps:$4 sm:$0xff]  }
  0xea   :  { %1817 = vmatprep.subr.bf16.mxu1 %v3960_v49  ;;  %v4050_v49 = vld [vmem:[#allocation2 + $0x3e4] ss:$8 sps:$4 sm:$0xff]  }
  0xec   :  { %1022 = vmatpush1.bf16.msra.mxu0 %v3955_v50  ;;  %v4048_v50 = vld [vmem:[#allocation2 + $0x3e0] ss:$8 sps:$4 sm:$0xff]  }
  0xed   :  { %1818 = vmatpush1.bf16.msra.mxu1 %v3958_v51  ;;  %1023 = vmatprep.subr.bf16.mxu0 %v3963_v52  ;;  %v4053_v51 = vld [vmem:[#allocation2 + $0x3f4] ss:$8 sps:$4 sm:$0xff]   ;;  %v4051_v52 = vld [vmem:[#allocation2 + $0x3f0] ss:$8 sps:$4 sm:$0xff]  }
  0xee   :  { %1819 = vmatprep.subr.bf16.mxu1 %v3966_v53  ;;  %v3214_v53 = vcombine.low %v4558_v17, %v4563_v18  ;;  %v4093_v17 = vld [vmem:[#allocation6 + $0xc8] ss:$16 sps:$4 sm:$0xff]   ;;  %v4098_v18 = vld [vmem:[#allocation6 + $0xe4] ss:$16 sps:$4 sm:$0xff]  }
  0xf0   :  { %1024 = vmatpush1.bf16.msra.mxu0 %v3961_v54  ;;  %v4054_v54 = vld [vmem:[#allocation6] ss:$16 sps:$4 sm:$0xff]  }
  0xf1   :  { %1820 = vmatpush1.bf16.msra.mxu1 %v3964_v55  ;;  %1025 = vmatprep.subr.bf16.mxu0 %v3969_v56  ;;  %v4056_v55 = vld [vmem:[#allocation6 + $0x4] ss:$16 sps:$4 sm:$0xff]   ;;  %v4057_v56 = vld [vmem:[#allocation6 + $0x8] ss:$16 sps:$4 sm:$0xff]  }
  0xf2   :  { %1821 = vmatprep.subr.bf16.mxu1 %v3972_v57  ;;  %v4059_v57 = vld [vmem:[#allocation6 + $0xc] ss:$16 sps:$4 sm:$0xff]  }
  0xf4   :  { %1026 = vmatpush1.bf16.msra.mxu0 %v3967_v58  ;;  %v4062_v58 = vld [vmem:[#allocation6 + $0x24] ss:$16 sps:$4 sm:$0xff]  }
  0xf5   :  { %1822 = vmatpush1.bf16.msra.mxu1 %v3970_v59  ;;  %1027 = vmatprep.subr.bf16.mxu0 %v3975_v60  ;;  %v4065_v59 = vld [vmem:[#allocation6 + $0x2c] ss:$16 sps:$4 sm:$0xff]   ;;  %v4060_v60 = vld [vmem:[#allocation6 + $0x20] ss:$16 sps:$4 sm:$0xff]  }
  0xf6   :  { %1823 = vmatprep.subr.bf16.mxu1 %v3978_v61  ;;  %v4063_v61 = vld [vmem:[#allocation6 + $0x28] ss:$16 sps:$4 sm:$0xff]  }
  0xf8   :  { %1028 = vmatpush1.bf16.msra.mxu0 %v3973_v62  ;;  %v4068_v62 = vld [vmem:[#allocation6 + $0x44] ss:$16 sps:$4 sm:$0xff]  }
  0xf9   :  { %1824 = vmatpush1.bf16.msra.mxu1 %v3976_v63  ;;  %1029 = vmatprep.subr.bf16.mxu0 %v3981_v0  ;;  %v4071_v63 = vld [vmem:[#allocation6 + $0x4c] ss:$16 sps:$4 sm:$0xff]   ;;  %v4066_v0 = vld [vmem:[#allocation6 + $0x40] ss:$16 sps:$4 sm:$0xff]  }
  0xfa   :  { %1825 = vmatprep.subr.bf16.mxu1 %v3984_v1  ;;  %v4069_v1 = vld [vmem:[#allocation6 + $0x48] ss:$16 sps:$4 sm:$0xff]  }
  0xfc   :  { %1030 = vmatpush1.bf16.msra.mxu0 %v3979_v2  ;;  %v4074_v2 = vld [vmem:[#allocation6 + $0x64] ss:$16 sps:$4 sm:$0xff]  }
  0xfd   :  { %1826 = vmatpush1.bf16.msra.mxu1 %v3982_v3  ;;  %1031 = vmatprep.subr.bf16.mxu0 %v3987_v4  ;;  %v4077_v3 = vld [vmem:[#allocation6 + $0x6c] ss:$16 sps:$4 sm:$0xff]   ;;  %v4072_v4 = vld [vmem:[#allocation6 + $0x60] ss:$16 sps:$4 sm:$0xff]  }
  0xfe   :  { %1827 = vmatprep.subr.bf16.mxu1 %v3990_v5  ;;  %v4075_v5 = vld [vmem:[#allocation6 + $0x68] ss:$16 sps:$4 sm:$0xff]  }
 0x100   :  { %1032 = vmatpush1.bf16.msra.mxu0 %v3985_v6  ;;  %v4080_v6 = vld [vmem:[#allocation6 + $0x84] ss:$16 sps:$4 sm:$0xff]  }
 0x101   :  { %1828 = vmatpush1.bf16.msra.mxu1 %v3988_v7  ;;  %1033 = vmatprep.subr.bf16.mxu0 %v3993_v8  ;;  %v4083_v7 = vld [vmem:[#allocation6 + $0x8c] ss:$16 sps:$4 sm:$0xff]   ;;  %v4078_v8 = vld [vmem:[#allocation6 + $0x80] ss:$16 sps:$4 sm:$0xff]  }
 0x102   :  { %1829 = vmatprep.subr.bf16.mxu1 %v3996_v9  ;;  %v4081_v9 = vld [vmem:[#allocation6 + $0x88] ss:$16 sps:$4 sm:$0xff]  }
 0x104   :  { %1034 = vmatpush1.bf16.msra.mxu0 %v3991_v10  ;;  %v4086_v10 = vld [vmem:[#allocation6 + $0xa4] ss:$16 sps:$4 sm:$0xff]  }
 0x105   :  { %1830 = vmatpush1.bf16.msra.mxu1 %v3994_v11  ;;  %1035 = vmatprep.subr.bf16.mxu0 %v3999_v12  ;;  %v4089_v11 = vld [vmem:[#allocation6 + $0xac] ss:$16 sps:$4 sm:$0xff]   ;;  %v4084_v12 = vld [vmem:[#allocation6 + $0xa0] ss:$16 sps:$4 sm:$0xff]  }
 0x106   :  { %1831 = vmatprep.subr.bf16.mxu1 %v4002_v13  ;;  %v4087_v13 = vld [vmem:[#allocation6 + $0xa8] ss:$16 sps:$4 sm:$0xff]  }
 0x108   :  { %1036 = vmatpush1.bf16.msra.mxu0 %v3997_v14  ;;  %v4092_v14 = vld [vmem:[#allocation6 + $0xc4] ss:$16 sps:$4 sm:$0xff]  }
 0x109   :  { %1832 = vmatpush1.bf16.msra.mxu1 %v4000_v15  ;;  %1048 = vmatprep.subr.bf16.mxu0 %v4008_v16  ;;  %v4095_v15 = vld [vmem:[#allocation6 + $0xcc] ss:$16 sps:$4 sm:$0xff]   ;;  %v4090_v16 = vld [vmem:[#allocation6 + $0xc0] ss:$16 sps:$4 sm:$0xff]  }
 0x10a   :  { %2670 = vmatprep.subr.bf16.mxu1 %v4056_v55  ;;  %v4155_v55 = vld [vmem:[#allocation6 + $0x20c] ss:$16 sps:$4 sm:$0xff]  }
 0x10b   :  { %1038 = vmatmul.mubr.bf16.vlgmr.msra.gmra.mrb[0].mxu0 %v3212_v21  ;;  %v4099_v21 = vld [vmem:[#allocation6 + $0xe8] ss:$16 sps:$4 sm:$0xff]  }
 0x10c   :  { %1834 = vmatmul.mubr.bf16.vlgmr.msra.gmra.mrb[0].mxu1 %v4003_v19  ;;  %1049 = vmatpush1.bf16.msra.mxu0 %v4006_v20  ;;  %v4101_v19 = vld [vmem:[#allocation6 + $0xec] ss:$16 sps:$4 sm:$0xff]   ;;  %v4096_v20 = vld [vmem:[#allocation6 + $0xe0] ss:$16 sps:$4 sm:$0xff]  }
 0x10d   :  { %1080 = vmatprep.mubr.bf16.mxu0 %v3215_v25  ;;  %1050 = vmatprep.subr.bf16.mxu0 %v4011_v22  ;;  %v4104_v22 = vld [vmem:[#allocation6 + $0x104] ss:$16 sps:$4 sm:$0xff]   ;;  %v4107_v25 = vld [vmem:[#allocation6 + $0x10c] ss:$16 sps:$4 sm:$0xff]  }
 0x10e   :  { %2671 = vmatpush1.bf16.msra.mxu1 %v4054_v54  ;;  %v4152_v54 = vld [vmem:[#allocation6 + $0x204] ss:$16 sps:$4 sm:$0xff]  }
 0x10f   :  { %2672 = vmatprep.subr.bf16.mxu1 %v4062_v58 }
 0x110   :  { %1051 = vmatpush1.bf16.msra.mxu0 %v4009_v26  ;;  %v4102_v26 = vld [vmem:[#allocation6 + $0x100] ss:$16 sps:$4 sm:$0xff]  }
 0x111   :  { %1052 = vmatprep.subr.bf16.mxu0 %v4014_v27  ;;  %v4105_v27 = vld [vmem:[#allocation6 + $0x108] ss:$16 sps:$4 sm:$0xff]  }
 0x112   :  { %2673 = vmatpush1.bf16.msra.mxu1 %v4060_v60 }
 0x113   :  { %2674 = vmatprep.subr.bf16.mxu1 %v4068_v62 }
 0x114   :  { %1053 = vmatpush1.bf16.msra.mxu0 %v4012_v28  ;;  %v4110_v28 = vld [vmem:[#allocation6 + $0x124] ss:$16 sps:$4 sm:$0xff]  }
 0x115   :  { %1054 = vmatprep.subr.bf16.mxu0 %v4017_v29  ;;  %v4113_v29 = vld [vmem:[#allocation6 + $0x12c] ss:$16 sps:$4 sm:$0xff]  }
 0x116   :  { %2675 = vmatpush1.bf16.msra.mxu1 %v4066_v0 }
 0x117   :  { %2676 = vmatprep.subr.bf16.mxu1 %v4074_v2 }
 0x118   :  { %1055 = vmatpush1.bf16.msra.mxu0 %v4015_v30  ;;  %v4108_v30 = vld [vmem:[#allocation6 + $0x120] ss:$16 sps:$4 sm:$0xff]  }
 0x119   :  { %1056 = vmatprep.subr.bf16.mxu0 %v4020_v23  ;;  %v4111_v23 = vld [vmem:[#allocation6 + $0x128] ss:$16 sps:$4 sm:$0xff]  }
 0x11a   :  { %2677 = vmatpush1.bf16.msra.mxu1 %v4072_v4 }
 0x11b   :  { %2678 = vmatprep.subr.bf16.mxu1 %v4080_v6 }
 0x11c   :  { %1057 = vmatpush1.bf16.msra.mxu0 %v4018_v24  ;;  %v4116_v24 = vld [vmem:[#allocation6 + $0x144] ss:$16 sps:$4 sm:$0xff]  }
 0x11d   :  { %1058 = vmatprep.subr.bf16.mxu0 %v4023_v31  ;;  %v4119_v31 = vld [vmem:[#allocation6 + $0x14c] ss:$16 sps:$4 sm:$0xff]  }
 0x11e   :  { %2679 = vmatpush1.bf16.msra.mxu1 %v4078_v8 }
 0x11f   :  { %2680 = vmatprep.subr.bf16.mxu1 %v4086_v10 }
 0x120   :  { %1059 = vmatpush1.bf16.msra.mxu0 %v4021_v32  ;;  %v4114_v32 = vld [vmem:[#allocation6 + $0x140] ss:$16 sps:$4 sm:$0xff]  }
 0x121   :  { %1060 = vmatprep.subr.bf16.mxu0 %v4026_v33  ;;  %v4117_v33 = vld [vmem:[#allocation6 + $0x148] ss:$16 sps:$4 sm:$0xff]  }
 0x122   :  { %2681 = vmatpush1.bf16.msra.mxu1 %v4084_v12 }
 0x123   :  { %2682 = vmatprep.subr.bf16.mxu1 %v4092_v14 }
 0x124   :  { %1061 = vmatpush1.bf16.msra.mxu0 %v4024_v34  ;;  %v4122_v34 = vld [vmem:[#allocation6 + $0x164] ss:$16 sps:$4 sm:$0xff]  }
 0x125   :  { %1062 = vmatprep.subr.bf16.mxu0 %v4029_v35  ;;  %v4125_v35 = vld [vmem:[#allocation6 + $0x16c] ss:$16 sps:$4 sm:$0xff]  }
 0x126   :  { %2683 = vmatpush1.bf16.msra.mxu1 %v4090_v16  ;;  %v227_v16 = vld [vmem:[%s4615_s3] sm:$0x3] }
 0x127   :  { %2684 = vmatprep.subr.bf16.mxu1 %v4098_v18 }
 0x128   :  { %1063 = vmatpush1.bf16.msra.mxu0 %v4027_v36  ;;  %v4120_v36 = vld [vmem:[#allocation6 + $0x160] ss:$16 sps:$4 sm:$0xff]  }
 0x129   :  { %1064 = vmatprep.subr.bf16.mxu0 %v4032_v37  ;;  %v4123_v37 = vld [vmem:[#allocation6 + $0x168] ss:$16 sps:$4 sm:$0xff]  }
 0x12a   :  { %2685 = vmatpush1.bf16.msra.mxu1 %v4096_v20 }
 0x12b   :  { %2686 = vmatprep.subr.bf16.mxu1 %v4104_v22 }
 0x12c   :  { %1065 = vmatpush1.bf16.msra.mxu0 %v4030_v38  ;;  %v4128_v38 = vld [vmem:[#allocation6 + $0x184] ss:$16 sps:$4 sm:$0xff]  }
 0x12d   :  { %1066 = vmatprep.subr.bf16.mxu0 %v4035_v39  ;;  %v4131_v39 = vld [vmem:[#allocation6 + $0x18c] ss:$16 sps:$4 sm:$0xff]  }
 0x12e   :  { %2687 = vmatpush1.bf16.msra.mxu1 %v4102_v26 }
 0x12f   :  { %2688 = vmatprep.subr.bf16.mxu1 %v4110_v28 }
 0x130   :  { %1067 = vmatpush1.bf16.msra.mxu0 %v4033_v40  ;;  %v4126_v40 = vld [vmem:[#allocation6 + $0x180] ss:$16 sps:$4 sm:$0xff]  }
 0x131   :  { %1068 = vmatprep.subr.bf16.mxu0 %v4038_v41  ;;  %v4129_v41 = vld [vmem:[#allocation6 + $0x188] ss:$16 sps:$4 sm:$0xff]  }
 0x132   :  { %2689 = vmatpush1.bf16.msra.mxu1 %v4108_v30 }
 0x133   :  { %2690 = vmatprep.subr.bf16.mxu1 %v4116_v24 }
 0x134   :  { %1069 = vmatpush1.bf16.msra.mxu0 %v4036_v42  ;;  %v4132_v42 = vld [vmem:[#allocation6 + $0x1a0] ss:$16 sps:$4 sm:$0xff]  }
 0x135   :  { %1070 = vmatprep.subr.bf16.mxu0 %v4041_v43  ;;  %v4134_v43 = vld [vmem:[#allocation6 + $0x1a4] ss:$16 sps:$4 sm:$0xff]  }
 0x136   :  { %2691 = vmatpush1.bf16.msra.mxu1 %v4114_v32 }
 0x137   :  { %2692 = vmatprep.subr.bf16.mxu1 %v4122_v34 }
 0x138   :  { %1071 = vmatpush1.bf16.msra.mxu0 %v4039_v44  ;;  %v4135_v44 = vld [vmem:[#allocation6 + $0x1a8] ss:$16 sps:$4 sm:$0xff]  }
 0x139   :  { %1072 = vmatprep.subr.bf16.mxu0 %v4044_v45  ;;  %v4137_v45 = vld [vmem:[#allocation6 + $0x1ac] ss:$16 sps:$4 sm:$0xff]  }
 0x13a   :  { %2693 = vmatpush1.bf16.msra.mxu1 %v4120_v36 }
 0x13b   :  { %2694 = vmatprep.subr.bf16.mxu1 %v4128_v38 }
 0x13c   :  { %1073 = vmatpush1.bf16.msra.mxu0 %v4042_v46  ;;  %v4140_v46 = vld [vmem:[#allocation6 + $0x1c4] ss:$16 sps:$4 sm:$0xff]  }
 0x13d   :  { %1074 = vmatprep.subr.bf16.mxu0 %v4047_v47  ;;  %v4143_v47 = vld [vmem:[#allocation6 + $0x1cc] ss:$16 sps:$4 sm:$0xff]  }
 0x13e   :  { %2695 = vmatpush1.bf16.msra.mxu1 %v4126_v40 }
 0x13f   :  { %2696 = vmatprep.subr.bf16.mxu1 %v4134_v43 }
 0x140   :  { %1075 = vmatpush1.bf16.msra.mxu0 %v4045_v48  ;;  %v4138_v48 = vld [vmem:[#allocation6 + $0x1c0] ss:$16 sps:$4 sm:$0xff]  }
 0x141   :  { %1076 = vmatprep.subr.bf16.mxu0 %v4050_v49  ;;  %v4141_v49 = vld [vmem:[#allocation6 + $0x1c8] ss:$16 sps:$4 sm:$0xff]  }
 0x142   :  { %2697 = vmatpush1.bf16.msra.mxu1 %v4132_v42 }
 0x143   :  { %2698 = vmatprep.subr.bf16.mxu1 %v4140_v46  ;;  %v4150_v46 = vld [vmem:[#allocation6 + $0x200] ss:$16 sps:$4 sm:$0xff]  }
 0x144   :  { %1077 = vmatpush1.bf16.msra.mxu0 %v4048_v50  ;;  %v4146_v50 = vld [vmem:[#allocation6 + $0x1e4] ss:$16 sps:$4 sm:$0xff]  }
 0x145   :  { %1078 = vmatprep.subr.bf16.mxu0 %v4053_v51  ;;  %v4149_v51 = vld [vmem:[#allocation6 + $0x1ec] ss:$16 sps:$4 sm:$0xff]  }
 0x146   :  { %2699 = vmatpush1.bf16.msra.mxu1 %v4138_v48  ;;  %v4158_v48 = vld [vmem:[#allocation6 + $0x224] ss:$16 sps:$4 sm:$0xff]  }
 0x147   :  { %2700 = vmatprep.subr.bf16.mxu1 %v4146_v50  ;;  %v4156_v50 = vld [vmem:[#allocation6 + $0x220] ss:$16 sps:$4 sm:$0xff]  }
 0x148   :  { %1079 = vmatpush1.bf16.msra.mxu0 %v4051_v52  ;;  %v4144_v52 = vld [vmem:[#allocation6 + $0x1e0] ss:$16 sps:$4 sm:$0xff]  }
 0x149   :  { %2756 = vmatprep.subr.bf16.mxu0 %v4059_v57 }
 0x14a   :  { %2701 = vmatpush1.bf16.msra.mxu1 %v4144_v52  ;;  %v4164_v52 = vld [vmem:[#allocation6 + $0x244] ss:$16 sps:$4 sm:$0xff]  }
 0x14b   :  { %1081 = vmatmul.mubr.bf16.vlgmr.msra.gmra.mrb[0].mxu0 %v3214_v53  ;;  %v4147_v53 = vld [vmem:[#allocation6 + $0x1e8] ss:$16 sps:$4 sm:$0xff]   ;;  %2713 = vmatprep.subr.bf16.mxu1 %v4152_v54  ;;  %v4162_v54 = vld [vmem:[#allocation6 + $0x240] ss:$16 sps:$4 sm:$0xff]  }
 0x14c   :  { %2757 = vmatpush1.bf16.msra.mxu0 %v4057_v56  ;;  %v229_v56 = vlaneseq }
 0x14d   :  { %2758 = vmatprep.subr.bf16.mxu0 %v4065_v59  ;;  %v1193_v59 = vld [vmem:[%s4617_s5] sm:$0x3] }
 0x14e   :  { %v4574_v57 = vshrl.u32 %v229_v56, 7  ;;  %v4170_v56 = vld [vmem:[#allocation6 + $0x264] ss:$16 sps:$4 sm:$0xff]  }
 0x150   :  { %2759 = vmatpush1.bf16.msra.mxu0 %v4063_v61  ;;  %v4577_v58 = vsub.s32 0, %v4574_v57  ;;  %v4584_v6 = vsub.s32 1, %v4574_v57 }
 0x151   :  { %2760 = vmatprep.subr.bf16.mxu0 %v4071_v63 }
 0x152   :  { %v1198_v60 = vrot.slane %v1193_v59, %v4577_v58  ;;  %v236_v18 = vrot.slane %v227_v16, %v4584_v6 }
 0x154   :  { %2761 = vmatpush1.bf16.msra.mxu0 %v4069_v1 }
 0x155   :  { %2762 = vmatprep.subr.bf16.mxu0 %v4077_v3 }
 0x158   :  { %2763 = vmatpush1.bf16.msra.mxu0 %v4075_v5 }
 0x159   :  { %2764 = vmatprep.subr.bf16.mxu0 %v4083_v7  ;;  %v1202_v7 = vrot.slane %v1193_v59, %v4584_v6  ;;  %v4173_v59 = vld [vmem:[#allocation6 + $0x26c] ss:$16 sps:$4 sm:$0xff]  }
 0x15c   :  { %2765 = vmatpush1.bf16.msra.mxu0 %v4081_v9 }
 0x15d   :  { %2766 = vmatprep.subr.bf16.mxu0 %v4089_v11 }
 0x160   :  { %2767 = vmatpush1.bf16.msra.mxu0 %v4087_v13 }
 0x161   :  { %2768 = vmatprep.subr.bf16.mxu0 %v4095_v15 }
 0x164   :  { %2769 = vmatpush1.bf16.msra.mxu0 %v4093_v17  ;;  %v232_v17 = vrot.slane %v227_v16, %v4577_v58  ;;  %v4203_v16 = vld [vmem:[#allocation6 + $0x30c] ss:$16 sps:$4 sm:$0xff]  }
 0x165   :  { %2770 = vmatprep.subr.bf16.mxu0 %v4101_v19 }
 0x168   :  { %2771 = vmatpush1.bf16.msra.mxu0 %v4099_v21 }
 0x169   :  { %2772 = vmatprep.subr.bf16.mxu0 %v4107_v25 }
 0x16c   :  { %2773 = vmatpush1.bf16.msra.mxu0 %v4105_v27 }
 0x16d   :  { %2774 = vmatprep.subr.bf16.mxu0 %v4113_v29 }
 0x170   :  { %2775 = vmatpush1.bf16.msra.mxu0 %v4111_v23 }
 0x171   :  { %2776 = vmatprep.subr.bf16.mxu0 %v4119_v31 }
 0x174   :  { %2777 = vmatpush1.bf16.msra.mxu0 %v4117_v33 }
 0x175   :  { %2778 = vmatprep.subr.bf16.mxu0 %v4125_v35 }
 0x178   :  { %2779 = vmatpush1.bf16.msra.mxu0 %v4123_v37 }
 0x179   :  { %2780 = vmatprep.subr.bf16.mxu0 %v4131_v39 }
 0x17c   :  { %2781 = vmatpush1.bf16.msra.mxu0 %v4129_v41 }
 0x17d   :  { %2782 = vmatprep.subr.bf16.mxu0 %v4137_v45 }
 0x180   :  { %2783 = vmatpush1.bf16.msra.mxu0 %v4135_v44 }
 0x181   :  { %2784 = vmatprep.subr.bf16.mxu0 %v4143_v47  ;;  %v4153_v47 = vld [vmem:[#allocation6 + $0x208] ss:$16 sps:$4 sm:$0xff]  }
 0x184   :  { %2785 = vmatpush1.bf16.msra.mxu0 %v4141_v49  ;;  %v4161_v49 = vld [vmem:[#allocation6 + $0x22c] ss:$16 sps:$4 sm:$0xff]  }
 0x185   :  { %2786 = vmatprep.subr.bf16.mxu0 %v4149_v51  ;;  %v4159_v51 = vld [vmem:[#allocation6 + $0x228] ss:$16 sps:$4 sm:$0xff]  }
 0x188   :  { %2787 = vmatpush1.bf16.msra.mxu0 %v4147_v53  ;;  %v4167_v53 = vld [vmem:[#allocation6 + $0x24c] ss:$16 sps:$4 sm:$0xff]  }
 0x189   :  { %2799 = vmatprep.subr.bf16.mxu0 %v4155_v55  ;;  %v4165_v55 = vld [vmem:[#allocation6 + $0x248] ss:$16 sps:$4 sm:$0xff]  }
 0x1df   :  { %v1835_v61 = vpop.f32.mrb[0].mxu1 }
 0x1e0   :  { %v3659_v62 = vadd.f32 %v1835_v61, %v1198_v60  ;;  %v1837_v63 = vpop.f32.mrb[1].mxu1  ;;  %v4171_v61 = vld [vmem:[#allocation6 + $0x268] ss:$16 sps:$4 sm:$0xff]  }
 0x1e1   :  { %v1839_v0 = vpop.f32.mrb[2].mxu1  ;;  %v3660_v8 = vadd.f32 %v1837_v63, %v1202_v7  ;;  %v4179_v63 = vld [vmem:[#allocation6 + $0x28c] ss:$16 sps:$4 sm:$0xff]  }
 0x1e2   :  { %v3661_v1 = vadd.f32 %v1839_v0, %v1198_v60  ;;  %v1841_v2 = vpop.f32.mrb[3].mxu1  ;;  %v1858_v3 = vmax.f32 %v3659_v62, 0.0  ;;  %v4168_v60 = vld [vmem:[#allocation6 + $0x260] ss:$16 sps:$4 sm:$0xff]   ;;  %v4176_v62 = vld [vmem:[#allocation6 + $0x284] ss:$16 sps:$4 sm:$0xff]  }
 0x1e3   :  { %v3662_v9 = vadd.f32 %v1841_v2, %v1202_v7  ;;  %v3448_v10 = vmul.f32 -1.442695, %v3660_v8  ;;  %v4174_v0 = vld [vmem:[#allocation6 + $0x280] ss:$16 sps:$4 sm:$0xff]   ;;  %v4182_v2 = vld [vmem:[#allocation6 + $0x2a4] ss:$16 sps:$4 sm:$0xff]  }
 0x1e4   :  { %v1859_v4 = vmax.f32 %v3661_v1, 0.0  ;;  %v4177_v1 = vld [vmem:[#allocation6 + $0x288] ss:$16 sps:$4 sm:$0xff]   ;;  %v4188_v7 = vld [vmem:[#allocation6 + $0x2c4] ss:$16 sps:$4 sm:$0xff]  }
 0x1e5   :  { %v3449_v11 = vmul.f32 -1.442695, %v3662_v9  ;;  %4278 = vpow2.f32 %v3448_v10  ;;  %v4191_v8 = vld [vmem:[#allocation6 + $0x2cc] ss:$16 sps:$4 sm:$0xff]   ;;  %v4186_v9 = vld [vmem:[#allocation6 + $0x2c0] ss:$16 sps:$4 sm:$0xff]  }
 0x1e6   :  { %v1879_v5 = vpack.c.bf16 %v1859_v4, %v1858_v3  ;;  %v4189_v10 = vld [vmem:[#allocation6 + $0x2c8] ss:$16 sps:$4 sm:$0xff]  }
 0x1e7   :  { %4280 = vpow2.f32 %v3449_v11  ;;  %v4194_v11 = vld [vmem:[#allocation6 + $0x2e4] ss:$16 sps:$4 sm:$0xff]  }
 0x1ef   :  { %v4279_v12 = vpop.eup %4278 }
 0x1f0   :  { %v1866_v14 = vadd.f32 1.0, %v4279_v12  ;;  %v4197_v12 = vld [vmem:[#allocation6 + $0x2ec] ss:$16 sps:$4 sm:$0xff]  }
 0x1f1   :  { %v4281_v13 = vpop.eup %4280 }
 0x1f2   :  { %v1867_v15 = vadd.f32 1.0, %v4281_v13  ;;  %4282 = vrcp.f32 %v1866_v14  ;;  %v4192_v13 = vld [vmem:[#allocation6 + $0x2e0] ss:$16 sps:$4 sm:$0xff]   ;;  %v4195_v14 = vld [vmem:[#allocation6 + $0x2e8] ss:$16 sps:$4 sm:$0xff]  }
 0x1f4   :  { %4284 = vrcp.f32 %v1867_v15  ;;  %v4200_v15 = vld [vmem:[#allocation6 + $0x304] ss:$16 sps:$4 sm:$0xff]  }
 0x1fc   :  { %v4283_v29 = vpop.eup %4282 }
 0x1fe   :  { %v4285_v32 = vpop.eup %4284 }
 0x21e   :  { %v1082_v19 = vpop.f32.mrb[0].mxu0 }
 0x21f   :  { %v3655_v20 = vadd.f32 %v1082_v19, %v232_v17  ;;  %v1084_v21 = vpop.f32.mrb[1].mxu0  ;;  %v4206_v19 = vld [vmem:[#allocation6 + $0x324] ss:$16 sps:$4 sm:$0xff]  }
 0x220   :  { %v3656_v22 = vadd.f32 %v1084_v21, %v236_v18  ;;  %v1086_v25 = vpop.f32.mrb[2].mxu0  ;;  %v4204_v21 = vld [vmem:[#allocation6 + $0x320] ss:$16 sps:$4 sm:$0xff]  }
 0x221   :  { %v1844_v26 = vmax.f32 %v3655_v20, 0.0  ;;  %v3657_v27 = vadd.f32 %v1086_v25, %v232_v17  ;;  %v1088_v28 = vpop.f32.mrb[3].mxu0  ;;  %v4198_v17 = vld [vmem:[#allocation6 + $0x300] ss:$16 sps:$4 sm:$0xff]   ;;  %v4209_v20 = vld [vmem:[#allocation6 + $0x32c] ss:$16 sps:$4 sm:$0xff]  }
 0x222   :  { %v3446_v30 = vmul.f32 -1.442695, %v3656_v22  ;;  %v3658_v23 = vadd.f32 %v1088_v28, %v236_v18  ;;  %v4201_v18 = vld [vmem:[#allocation6 + $0x308] ss:$16 sps:$4 sm:$0xff]   ;;  %v4212_v25 = vld [vmem:[#allocation6 + $0x344] ss:$16 sps:$4 sm:$0xff]  }
 0x223   :  { %v1872_v24 = vmul.f32 %v4283_v29, %v1844_v26  ;;  %v1845_v31 = vmax.f32 %v3657_v27, 0.0  ;;  %v4207_v22 = vld [vmem:[#allocation6 + $0x328] ss:$16 sps:$4 sm:$0xff]   ;;  %v4210_v27 = vld [vmem:[#allocation6 + $0x340] ss:$16 sps:$4 sm:$0xff]  }
 0x224   :  { %4286 = vpow2.f32 %v3446_v30  ;;  %v3447_v33 = vmul.f32 -1.442695, %v3658_v23  ;;  %v4213_v28 = vld [vmem:[#allocation6 + $0x348] ss:$16 sps:$4 sm:$0xff]   ;;  %v4218_v29 = vld [vmem:[#allocation6 + $0x364] ss:$16 sps:$4 sm:$0xff]  }
 0x225   :  { %v1873_v34 = vmul.f32 %v4285_v32, %v1845_v31  ;;  %v4592_v35 = vpack.c.bf16 %v1845_v31, %v1844_v26  ;;  %v4215_v26 = vld [vmem:[#allocation6 + $0x34c] ss:$16 sps:$4 sm:$0xff]   ;;  %v4216_v23 = vld [vmem:[#allocation6 + $0x360] ss:$16 sps:$4 sm:$0xff]   ;;  %v4224_v31 = vld [vmem:[#allocation6 + $0x384] ss:$16 sps:$4 sm:$0xff]  }
 0x226   :  { %4288 = vpow2.f32 %v3447_v33  ;;  %v4221_v30 = vld [vmem:[#allocation6 + $0x36c] ss:$16 sps:$4 sm:$0xff]   ;;  %v4222_v33 = vld [vmem:[#allocation6 + $0x380] ss:$16 sps:$4 sm:$0xff]  }
 0x227   :  { %v1874_v36 = vpack.c.bf16 %v1873_v34, %v1872_v24  ;;  %v4219_v24 = vld [vmem:[#allocation6 + $0x368] ss:$16 sps:$4 sm:$0xff]   ;;  %v4227_v32 = vld [vmem:[#allocation6 + $0x38c] ss:$16 sps:$4 sm:$0xff]  }
 0x228   :  { %v4225_v34 = vld [vmem:[#allocation6 + $0x388] ss:$16 sps:$4 sm:$0xff]  }
 0x22e   :  { %v4287_v37 = vpop.eup %4286 }
 0x22f   :  { %v1852_v38 = vadd.f32 1.0, %v4287_v37  ;;  %v4233_v37 = vld [vmem:[#allocation6 + $0x3ac] ss:$16 sps:$4 sm:$0xff]  }
 0x230   :  { %v4289_v39 = vpop.eup %4288 }
 0x231   :  { %4290 = vrcp.f32 %v1852_v38  ;;  %v1853_v40 = vadd.f32 1.0, %v4289_v39  ;;  %v4228_v38 = vld [vmem:[#allocation6 + $0x3a0] ss:$16 sps:$4 sm:$0xff]   ;;  %v4231_v39 = vld [vmem:[#allocation6 + $0x3a8] ss:$16 sps:$4 sm:$0xff]  }
 0x233   :  { %4292 = vrcp.f32 %v1853_v40  ;;  %v4236_v40 = vld [vmem:[#allocation6 + $0x3c4] ss:$16 sps:$4 sm:$0xff]  }
 0x23b   :  { %v4291_v41 = vpop.eup %4290 }
 0x23c   :  { %v1875_v42 = vmul.f32 %v4291_v41, %v1858_v3  ;;  %v4185_v3 = vld [vmem:[#allocation6 + $0x2ac] ss:$16 sps:$4 sm:$0xff]  }
 0x23d   :  { %v4293_v43 = vpop.eup %4292  ;;  %v4239_v41 = vld [vmem:[#allocation6 + $0x3cc] ss:$16 sps:$4 sm:$0xff]  }
 0x23e   :  { %v1876_v44 = vmul.f32 %v4293_v43, %v1859_v4  ;;  %v4180_v4 = vld [vmem:[#allocation6 + $0x2a0] ss:$16 sps:$4 sm:$0xff]   ;;  %v4237_v43 = vld [vmem:[#allocation6 + $0x3c8] ss:$16 sps:$4 sm:$0xff]  }
 0x240   :  { %v1877_v45 = vpack.c.bf16 %v1876_v44, %v1875_v42  ;;  %v4234_v42 = vld [vmem:[#allocation6 + $0x3c0] ss:$16 sps:$4 sm:$0xff]   ;;  %v4242_v44 = vld [vmem:[#allocation6 + $0x3e4] ss:$16 sps:$4 sm:$0xff]  }
 0x242   :  { %2702 = vmatprep.mubr.bf16.mxu1 %v1877_v45  ;;  %2788 = vmatprep.mubr.bf16.mxu0 %v1877_v45  ;;  %v4245_v45 = vld [vmem:[#allocation6 + $0x3ec] ss:$16 sps:$4 sm:$0xff]  }
 0x243   :  { %2703 = vmatmul.mubr.bf16.vlgmr.msra.gmra.mrb[4].mxu1 %v1874_v36  ;;  %2789 = vmatmul.mubr.bf16.vlgmr.msra.gmra.mrb[4].mxu0 %v1874_v36  ;;  %v4230_v36 = vld [vmem:[#allocation6 + $0x3a4] ss:$16 sps:$4 sm:$0xff]  }
 0x244   :  { %2714 = vmatpush1.bf16.msra.mxu1 %v4150_v46  ;;  %2800 = vmatpush1.bf16.msra.mxu0 %v4153_v47  ;;  %v4240_v46 = vld [vmem:[#allocation6 + $0x3e0] ss:$16 sps:$4 sm:$0xff]   ;;  %v4243_v47 = vld [vmem:[#allocation6 + $0x3e8] ss:$16 sps:$4 sm:$0xff]  }
 0x245   :  { %2745 = vmatprep.mubr.bf16.mxu1 %v1879_v5  ;;  %2831 = vmatprep.mubr.bf16.mxu0 %v1879_v5  ;;  %v4183_v5 = vld [vmem:[#allocation6 + $0x2a8] ss:$16 sps:$4 sm:$0xff]  }
 0x246   :  { %2715 = vmatprep.subr.bf16.mxu1 %v4158_v48  ;;  %2801 = vmatprep.subr.bf16.mxu0 %v4161_v49  ;;  %v4246_v48 = vld [vmem:[#allocation7 + $0x40] sm:$0xff]  }
 0x247   :  { %v4247_v49 = vld [vmem:[#allocation7] sm:$0xff]  }
 0x248   :  { %2716 = vmatpush1.bf16.msra.mxu1 %v4156_v50  ;;  %2802 = vmatpush1.bf16.msra.mxu0 %v4159_v51  ;;  %v4248_v50 = vld [vmem:[#allocation7 + $0x48] sm:$0xff]  }
 0x249   :  { %2717 = vmatprep.subr.bf16.mxu1 %v4164_v52  ;;  %2803 = vmatprep.subr.bf16.mxu0 %v4167_v53  ;;  %v4249_v51 = vld [vmem:[#allocation7 + $0x8] sm:$0xff]   ;;  %v4250_v52 = vld [vmem:[#allocation7 + $0x50] sm:$0xff]  }
 0x24a   :  { %v4251_v53 = vld [vmem:[#allocation7 + $0x10] sm:$0xff]  }
 0x24c   :  { %2718 = vmatpush1.bf16.msra.mxu1 %v4162_v54  ;;  %2804 = vmatpush1.bf16.msra.mxu0 %v4165_v55  ;;  %v4252_v54 = vld [vmem:[#allocation7 + $0x58] sm:$0xff]  }
 0x24d   :  { %2719 = vmatprep.subr.bf16.mxu1 %v4170_v56  ;;  %2805 = vmatprep.subr.bf16.mxu0 %v4173_v59  ;;  %v4253_v55 = vld [vmem:[#allocation7 + $0x18] sm:$0xff]   ;;  %v4254_v56 = vld [vmem:[#allocation7 + $0x60] sm:$0xff]  }
 0x24e   :  { %v4255_v59 = vld [vmem:[#allocation7 + $0x20] sm:$0xff]  }
 0x250   :  { %2720 = vmatpush1.bf16.msra.mxu1 %v4168_v60  ;;  %2806 = vmatpush1.bf16.msra.mxu0 %v4171_v61  ;;  %v4256_v60 = vld [vmem:[#allocation7 + $0x68] sm:$0xff]  }
 0x251   :  { %2721 = vmatprep.subr.bf16.mxu1 %v4176_v62  ;;  %2807 = vmatprep.subr.bf16.mxu0 %v4179_v63  ;;  %v4257_v61 = vld [vmem:[#allocation7 + $0x28] sm:$0xff]   ;;  %v4259_v62 = vld [vmem:[#allocation7 + $0x30] sm:$0xff]   ;;  %v4260_v63 = vld [vmem:[#allocation7 + $0x78] sm:$0xff]  }
 0x254   :  { %2722 = vmatpush1.bf16.msra.mxu1 %v4174_v0  ;;  %2808 = vmatpush1.bf16.msra.mxu0 %v4177_v1  ;;  %v4261_v0 = vld [vmem:[#allocation7 + $0x38] sm:$0xff]   ;;  %v4262_v1 = vld [vmem:[#allocation7 + $0xc0] sm:$0xff]  }
 0x255   :  { %2723 = vmatprep.subr.bf16.mxu1 %v4182_v2  ;;  %2809 = vmatprep.subr.bf16.mxu0 %v4185_v3  ;;  %v2020_v2 = vsub.s32 2, %v4574_v57  ;;  %v2008_v3 = vld [vmem:[%s4619_s7] sm:$0xf] }
 0x258   :  { %2724 = vmatpush1.bf16.msra.mxu1 %v4180_v4  ;;  %2810 = vmatpush1.bf16.msra.mxu0 %v4183_v5  ;;  %v2024_v4 = vsub.s32 3, %v4574_v57  ;;  %v2013_v5 = vrot.slane %v2008_v3, %v4577_v58 }
 0x259   :  { %2725 = vmatprep.subr.bf16.mxu1 %v4188_v7  ;;  %2811 = vmatprep.subr.bf16.mxu0 %v4191_v8  ;;  %v2021_v7 = vrot.slane %v2008_v3, %v2020_v2  ;;  %v2017_v8 = vrot.slane %v2008_v3, %v4584_v6 }
 0x25c   :  { %2726 = vmatpush1.bf16.msra.mxu1 %v4186_v9  ;;  %2812 = vmatpush1.bf16.msra.mxu0 %v4189_v10  ;;  %v2025_v9 = vrot.slane %v2008_v3, %v2024_v4 }
 0x25d   :  { %2727 = vmatprep.subr.bf16.mxu1 %v4194_v11  ;;  %2813 = vmatprep.subr.bf16.mxu0 %v4197_v12 }
 0x260   :  { %2728 = vmatpush1.bf16.msra.mxu1 %v4192_v13  ;;  %2814 = vmatpush1.bf16.msra.mxu0 %v4195_v14 }
 0x261   :  { %2729 = vmatprep.subr.bf16.mxu1 %v4200_v15  ;;  %2815 = vmatprep.subr.bf16.mxu0 %v4203_v16 }
 0x264   :  { %2730 = vmatpush1.bf16.msra.mxu1 %v4198_v17  ;;  %2816 = vmatpush1.bf16.msra.mxu0 %v4201_v18 }
 0x265   :  { %2731 = vmatprep.subr.bf16.mxu1 %v4206_v19  ;;  %2817 = vmatprep.subr.bf16.mxu0 %v4209_v20 }
 0x268   :  { %2732 = vmatpush1.bf16.msra.mxu1 %v4204_v21  ;;  %2818 = vmatpush1.bf16.msra.mxu0 %v4207_v22 }
 0x269   :  { %2733 = vmatprep.subr.bf16.mxu1 %v4212_v25  ;;  %2819 = vmatprep.subr.bf16.mxu0 %v4215_v26 }
 0x26c   :  { %2734 = vmatpush1.bf16.msra.mxu1 %v4210_v27  ;;  %2820 = vmatpush1.bf16.msra.mxu0 %v4213_v28 }
 0x26d   :  { %2735 = vmatprep.subr.bf16.mxu1 %v4218_v29  ;;  %2821 = vmatprep.subr.bf16.mxu0 %v4221_v30 }
 0x270   :  { %2736 = vmatpush1.bf16.msra.mxu1 %v4216_v23  ;;  %2822 = vmatpush1.bf16.msra.mxu0 %v4219_v24 }
 0x271   :  { %2737 = vmatprep.subr.bf16.mxu1 %v4224_v31  ;;  %2823 = vmatprep.subr.bf16.mxu0 %v4227_v32 }
 0x274   :  { %2738 = vmatpush1.bf16.msra.mxu1 %v4222_v33  ;;  %2824 = vmatpush1.bf16.msra.mxu0 %v4225_v34 }
 0x275   :  { %2739 = vmatprep.subr.bf16.mxu1 %v4230_v36  ;;  %2825 = vmatprep.subr.bf16.mxu0 %v4233_v37  ;;  %v4263_v36 = vld [vmem:[#allocation7 + $0x80] sm:$0xff]   ;;  %v4264_v37 = vld [vmem:[#allocation7 + $0xc8] sm:$0xff]  }
 0x278   :  { %2740 = vmatpush1.bf16.msra.mxu1 %v4228_v38  ;;  %2826 = vmatpush1.bf16.msra.mxu0 %v4231_v39  ;;  %v4265_v38 = vld [vmem:[#allocation7 + $0x88] sm:$0xff]   ;;  %v4266_v39 = vld [vmem:[#allocation7 + $0xd0] sm:$0xff]  }
 0x279   :  { %2741 = vmatprep.subr.bf16.mxu1 %v4236_v40  ;;  %2827 = vmatprep.subr.bf16.mxu0 %v4239_v41  ;;  %v4267_v40 = vld [vmem:[#allocation7 + $0x90] sm:$0xff]   ;;  %v4268_v41 = vld [vmem:[#allocation7 + $0xd8] sm:$0xff]  }
 0x27c   :  { %2742 = vmatpush1.bf16.msra.mxu1 %v4234_v42  ;;  %2828 = vmatpush1.bf16.msra.mxu0 %v4237_v43  ;;  %v4269_v42 = vld [vmem:[#allocation7 + $0x98] sm:$0xff]   ;;  %v4270_v43 = vld [vmem:[#allocation7 + $0xe0] sm:$0xff]  }
 0x27d   :  { %2743 = vmatprep.subr.bf16.mxu1 %v4242_v44  ;;  %2829 = vmatprep.subr.bf16.mxu0 %v4245_v45  ;;  %v4271_v44 = vld [vmem:[#allocation7 + $0xa0] sm:$0xff]   ;;  %v4272_v45 = vld [vmem:[#allocation7 + $0xe8] sm:$0xff]  }
 0x280   :  { %2744 = vmatpush1.bf16.msra.mxu1 %v4240_v46  ;;  %2830 = vmatpush1.bf16.msra.mxu0 %v4243_v47  ;;  %v4273_v46 = vld [vmem:[#allocation7 + $0xa8] sm:$0xff]   ;;  %v4274_v47 = vld [vmem:[#allocation7 + $0xf0] sm:$0xff]  }
 0x281   :  { %3611 = vmatprep.subr.bf16.mxu1 %v4246_v48  ;;  %v4275_v48 = vld [vmem:[#allocation7 + $0xb0] sm:$0xff]  }
 0x283   :  { %2746 = vmatmul.mubr.bf16.vlgmr.msra.gmra.mrb[4].mxu1 %v4592_v35  ;;  %2832 = vmatmul.mubr.bf16.vlgmr.msra.gmra.mrb[4].mxu0 %v4592_v35  ;;  %v4258_v35 = vld [vmem:[#allocation7 + $0x70] sm:$0xff]  }
 0x284   :  { %3612 = vmatpush3.bf16.msra.mxu1 %v4247_v49  ;;  %v4276_v49 = vld [vmem:[#allocation7 + $0xf8] sm:$0xff]  }
 0x285   :  { %3613 = vmatprep.subr.bf16.mxu1 %v4248_v50  ;;  %v4277_v50 = vld [vmem:[#allocation7 + $0xb8] sm:$0xff]  }
 0x288   :  { %3614 = vmatpush3.bf16.msra.mxu1 %v4249_v51 }
 0x289   :  { %3615 = vmatprep.subr.bf16.mxu1 %v4250_v52 }
 0x28c   :  { %3616 = vmatpush3.bf16.msra.mxu1 %v4251_v53 }
 0x28d   :  { %3617 = vmatprep.subr.bf16.mxu1 %v4252_v54 }
 0x290   :  { %3618 = vmatpush3.bf16.msra.mxu1 %v4253_v55 }
 0x291   :  { %3619 = vmatprep.subr.bf16.mxu1 %v4254_v56 }
 0x294   :  { %3620 = vmatpush3.bf16.msra.mxu1 %v4255_v59  ;;  %v3578_v59 = vld [vmem:[%s4621_s9] ss:$0 sm:$0xff] }
 0x295   :  { %3621 = vmatprep.subr.bf16.mxu1 %v4256_v60 }
 0x298   :  { %3622 = vmatpush3.bf16.msra.mxu1 %v4257_v61 }
 0x299   :  { %3623 = vmatprep.subr.bf16.mxu1 %v4258_v35 }
 0x29c   :  { %3624 = vmatpush3.bf16.msra.mxu1 %v4259_v62 }
 0x29d   :  { %3625 = vmatprep.subr.bf16.mxu1 %v4260_v63 }
 0x2a0   :  { %3626 = vmatpush3.bf16.msra.mxu1 %v4261_v0 }
 0x2a1   :  { %3633 = vmatprep.subr.bf16.mxu1 %v4262_v1 }
 0x356   :  { %v2747_v10 = vpop.f32.mrb[4].mxu1  ;;  %v2833_v11 = vpop.f32.mrb[4].mxu0 }
 0x357   :  { %v3663_v12 = vadd.f32 %v2747_v10, %v2013_v5  ;;  %v3667_v13 = vadd.f32 %v2833_v11, %v2021_v7  ;;  %v2749_v14 = vpop.f32.mrb[5].mxu1  ;;  %v2835_v15 = vpop.f32.mrb[5].mxu0 }
 0x358   :  { %v3664_v16 = vadd.f32 %v2749_v14, %v2017_v8  ;;  %v3668_v17 = vadd.f32 %v2835_v15, %v2025_v9  ;;  %v2751_v18 = vpop.f32.mrb[6].mxu1  ;;  %v2837_v19 = vpop.f32.mrb[6].mxu0 }
 0x359   :  { %v3665_v20 = vadd.f32 %v2751_v18, %v2013_v5  ;;  %v3669_v21 = vadd.f32 %v2837_v19, %v2021_v7  ;;  %v2753_v22 = vpop.f32.mrb[7].mxu1  ;;  %v2839_v57 = vpop.f32.mrb[7].mxu0  ;;  %v2842_v26 = vmax.f32 %v3663_v12, 0.0  ;;  %v2844_v27 = vmax.f32 %v3667_v13, 0.0 }
 0x35a   :  { %v3666_v25 = vadd.f32 %v2753_v22, %v2017_v8  ;;  %v3670_v58 = vadd.f32 %v2839_v57, %v2025_v9  ;;  %v2843_v29 = vmax.f32 %v3664_v16, 0.0  ;;  %v2845_v30 = vmax.f32 %v3668_v17, 0.0 }
 0x35b   :  { %v2846_v6 = vmax.f32 %v3665_v20, 0.0  ;;  %v2848_v28 = vmax.f32 %v3669_v21, 0.0 }
 0x35c   :  { %v2847_v23 = vmax.f32 %v3666_v25, 0.0  ;;  %v2849_v24 = vmax.f32 %v3670_v58, 0.0 }
 0x35d   :  { %v2850_v31 = vpack.c.bf16 %v2846_v6, %v2842_v26  ;;  %v2852_v32 = vpack.c.bf16 %v2848_v28, %v2844_v27 }
 0x35e   :  { %v2851_v33 = vpack.c.bf16 %v2847_v23, %v2843_v29  ;;  %v2853_v34 = vpack.c.bf16 %v2849_v24, %v2845_v30 }
 0x360   :  { %3149 = vmatprep.mubr.bf16.mxu1 %v2851_v33 }
 0x361   :  { %3150 = vmatmul.mubr.bf16.vlgmr.msra.gmra.mrb[8].mxu1 %v2850_v31 }
 0x362   :  { %3634 = vmatpush3.bf16.msra.mxu1 %v4263_v36  ;;  %3190 = vmatprep.mubr.bf16.mxu1 %v2853_v34 }
 0x363   :  { %3635 = vmatprep.subr.bf16.mxu1 %v4264_v37 }
 0x366   :  { %3636 = vmatpush3.bf16.msra.mxu1 %v4265_v38 }
 0x367   :  { %3637 = vmatprep.subr.bf16.mxu1 %v4266_v39 }
 0x36a   :  { %3638 = vmatpush3.bf16.msra.mxu1 %v4267_v40 }
 0x36b   :  { %3639 = vmatprep.subr.bf16.mxu1 %v4268_v41 }
 0x36e   :  { %3640 = vmatpush3.bf16.msra.mxu1 %v4269_v42 }
 0x36f   :  { %3641 = vmatprep.subr.bf16.mxu1 %v4270_v43 }
 0x372   :  { %3642 = vmatpush3.bf16.msra.mxu1 %v4271_v44 }
 0x373   :  { %3643 = vmatprep.subr.bf16.mxu1 %v4272_v45 }
 0x376   :  { %3644 = vmatpush3.bf16.msra.mxu1 %v4273_v46 }
 0x377   :  { %3645 = vmatprep.subr.bf16.mxu1 %v4274_v47 }
 0x37a   :  { %3646 = vmatpush3.bf16.msra.mxu1 %v4275_v48 }
 0x37b   :  { %3647 = vmatprep.subr.bf16.mxu1 %v4276_v49 }
 0x37e   :  { %3648 = vmatpush3.bf16.msra.mxu1 %v4277_v50 }
 0x381   :  { %3191 = vmatmul.mubr.bf16.vlgmr.msra.gmra.mrb[12].mxu1 %v2852_v32 }
 0x434   :  { %v3627_v51 = vpop.f32.mrb[8].mxu1 }
 0x435   :  { %v3628_v52 = vpop.f32.mrb[9].mxu1 }
 0x436   :  { %v3629_v53 = vadd.f32 %v3628_v52, %v3627_v51  ;;  %v3630_v54 = vpop.f32.mrb[10].mxu1 }
 0x437   :  { %v3631_v55 = vpop.f32.mrb[11].mxu1 }
 0x438   :  { %v3632_v56 = vadd.f32 %v3631_v55, %v3630_v54  ;;  %v3152_v35 = vadd.f32 %v3629_v53, %v3578_v59 }
 0x43a   :  { %v3155_v1 = vadd.f32 %v3632_v56, %v3578_v59 }
 0x454   :  { %v3649_v60 = vpop.f32.mrb[12].mxu1 }
 0x455   :  { %v3650_v61 = vpop.f32.mrb[13].mxu1 }
 0x456   :  { %v3651_v62 = vadd.f32 %v3650_v61, %v3649_v60  ;;  %v3652_v63 = vpop.f32.mrb[14].mxu1 }
 0x457   :  { %v3653_v0 = vpop.f32.mrb[15].mxu1 }
 0x458   :  { %v3193_v2 = vadd.f32 %v3651_v62, %v3152_v35  ;;  %v3654_v3 = vadd.f32 %v3653_v0, %v3652_v63 }
 0x45a   :  { %3199 = vst [vmem:[%s4622_s10] sm:$0xff] %v3193_v2  ;;  %v3196_v4 = vadd.f32 %v3654_v3, %v3155_v1 }
 0x45c   :  { %3200 = vst [vmem:[%s4622_s10 + $0x8] sm:$0xff] %v3196_v4 }
 0x45d   :  { %3205 = vsyncpa [#allocation3], 1 }
 0x45e   :  { %3206 = vsyncpa [#allocation5], 1 }
 0x45f   :  { %3207 = vsyncpa [#allocation8], 1 }

</bundles_post_ra>
